<compile_context>
chip_gen: v5e
topology: v5e:2x2
jax: 0.10.0
libtpu: 0.0.40
codegen_flags: <defaults>
</compile_context>

<pallas_src>
import functools

import jax
import jax.numpy as jnp
from jax.experimental import pallas as pl
from jax.experimental.pallas import tpu as pltpu

_EPS = 1e-5
_MXU_DTYPE = jnp.bfloat16          # MXU operand dtype; accumulation is f32.
_VMEM_LIMIT = 32 * 1024 * 1024     # >= default scoped limit on v5e/v6e/v7x.


def _tap(ref, ki, kj, ho, wo, stride):
  """Load one 3x3-conv tap (ho, wo, C) from a zero-padded spatial ref."""
  if stride == 1:
    return ref[ki:ki + ho, kj:kj + wo, :]
  # strided tap rows/cols for stride > 1 (not exercised by the demo shapes)
  return ref[pl.ds(ki, ho, stride), pl.ds(kj, wo, stride), :]


# --------------------------- pass A: conv1 (+1x1) ---------------------------
def _conv1_kernel(ho, wo, stride, has_shortcut, xp_ref, w1_ref, *rest):
  if has_shortcut:
    ws_ref, y1_ref, ysc_ref, stats_ref = rest
  else:
    y1_ref, stats_ref = rest

  b = pl.program_id(0)
  cin = xp_ref.shape[-1]
  n = ho * wo

  # im2col: one fused K = 9*Cin matmul instead of 9 tiny K=Cin matmuls.
  taps = [_tap(xp_ref, ki, kj, ho, wo, stride).reshape(n, cin)
          for ki in range(3) for kj in range(3)]
  patch = jnp.concatenate(taps, axis=-1)                    # (n, 9*cin) f32
  y1 = jnp.dot(patch.astype(_MXU_DTYPE), w1_ref[...],
               preferred_element_type=jnp.float32)          # (n, Cout) f32
  y1_ref[...] = y1

  # one-pass BN statistics: per-channel sum and sum-of-squares (f32)
  parts = [jnp.sum(y1, axis=0, keepdims=True),
           jnp.sum(y1 * y1, axis=0, keepdims=True)]

  if has_shortcut:
    # 1x1/stride shortcut conv: its input is exactly the centre tap (ki=kj=1).
    xc = taps[4]
    ysc = jnp.dot(xc.astype(_MXU_DTYPE), ws_ref[...],
                  preferred_element_type=jnp.float32)
    ysc_ref[...] = ysc
    parts += [jnp.sum(ysc, axis=0, keepdims=True),
              jnp.sum(ysc * ysc, axis=0, keepdims=True)]

  part = jnp.concatenate(parts, axis=0)

  @pl.when(b == 0)
  def _():
    stats_ref[...] = jnp.zeros_like(stats_ref)
  stats_ref[...] += part


# ----------------------- pass B: BN1 + ReLU + conv2 --------------------------
def _conv2_kernel(ho, wo, y1_ref, sc1_ref, sh1_ref, w2_ref,
                  y2_ref, stats_ref, h1pad_ref):
  b = pl.program_id(0)
  c = y2_ref.shape[-1]
  n = ho * wo

  # BN1 applied as a precomputed per-channel affine, then ReLU (all f32).
  h1 = jnp.maximum(y1_ref[...] * sc1_ref[...] + sh1_ref[...], 0.0)

  # Persistent padded scratch: zero it only on the first grid step; the
  # interior write below never touches the halo, so the halo stays zero.
  @pl.when(b == 0)
  def _():
    h1pad_ref[...] = jnp.zeros_like(h1pad_ref)
  h1pad_ref[1:1 + ho, 1:1 + wo, :] = h1.reshape(ho, wo, c)

  # conv2 as one fused K = 9*Cout matmul (stride 1, padding 1).
  taps = [h1pad_ref[ki:ki + ho, kj:kj + wo, :].reshape(n, c)
          for ki in range(3) for kj in range(3)]
  patch = jnp.concatenate(taps, axis=-1)                    # (n, 9*c) f32
  y2 = jnp.dot(patch.astype(_MXU_DTYPE), w2_ref[...],
               preferred_element_type=jnp.float32)
  y2_ref[...] = y2

  part = jnp.concatenate([jnp.sum(y2, axis=0, keepdims=True),
                          jnp.sum(y2 * y2, axis=0, keepdims=True)], axis=0)

  @pl.when(b == 0)
  def _():
    stats_ref[...] = jnp.zeros_like(stats_ref)
  stats_ref[...] += part


# ------------------- pass C: BN2 + shortcut-BN + add + ReLU ------------------
def _fuse_kernel(has_shortcut, y2_ref, sc_ref, s2_ref, t2_ref, *rest):
  if has_shortcut:
    ss_ref, ts_ref, out_ref = rest
    idn = sc_ref[...] * ss_ref[...] + ts_ref[...]
  else:
    (out_ref,) = rest
    idn = sc_ref[...]
  out_ref[...] = jnp.maximum(y2_ref[...] * s2_ref[...] + t2_ref[...] + idn, 0.0)


# --------------------------------- wrapper -----------------------------------
def _bn_affine(s, ssq, n, gamma, beta):
  """Fold training-mode BN into a per-channel (scale, shift) affine."""
  mean = s / n
  var = ssq / n - mean * mean
  scale = gamma * jax.lax.rsqrt(var + _EPS)
  shift = beta - mean * scale
  return scale, shift


def residual_block(x_nchw, params, stride=1):
  """x_nchw: (B, Cin, H, W) float32 -> (B, Cout, Ho, Wo) float32."""
  B, Cin, H, W = x_nchw.shape
  w1 = params["w1"]                      # (Cout, Cin, 3, 3) torch OIHW
  Cout = w1.shape[0]
  Ho = (H + 2 - 3) // stride + 1
  Wo = (W + 2 - 3) // stride + 1
  N = Ho * Wo
  has_shortcut = (stride != 1) or (Cin != Cout)
  n_elems = float(B * N)

  x_nhwc = jnp.transpose(x_nchw, (0, 2, 3, 1)).astype(jnp.float32)
  xp = jnp.pad(x_nhwc, ((0, 0), (1, 1), (1, 1), (0, 0)))     # (B, H+2, W+2, Cin)

  def conv3x3_w(w):   # OIHW -> (9*Cin, Cout), matches the tap-concat order
    return jnp.transpose(w, (2, 3, 1, 0)).reshape(
        9 * w.shape[1], w.shape[0]).astype(_MXU_DTYPE)

  w1f = conv3x3_w(w1)
  w2f = conv3x3_w(params["w2"])

  def cparams(sem):
    return pltpu.CompilerParams(dimension_semantics=sem,
                                vmem_limit_bytes=_VMEM_LIMIT)

  blk_act = pl.BlockSpec((None, N, Cout), lambda b: (b, 0, 0))
  def blk_full(shape):
    return pl.BlockSpec(shape, lambda b: (0,) * len(shape))

  # ---- pass A: conv1 (+ shortcut conv) + BN1/BN_s statistics ----
  n_stats = 4 if has_shortcut else 2
  in_a = [pl.BlockSpec((None, H + 2, W + 2, Cin), lambda b: (b, 0, 0, 0)),
          blk_full((9 * Cin, Cout))]
  args_a = [xp, w1f]
  out_shape_a = [jax.ShapeDtypeStruct((B, N, Cout), jnp.float32)]
  out_specs_a = [blk_act]
  if has_shortcut:
    ws = params["ws"][:, :, 0, 0].T.astype(_MXU_DTYPE)        # (Cin, Cout)
    in_a.append(blk_full((Cin, Cout)))
    args_a.append(ws)
    out_shape_a.append(jax.ShapeDtypeStruct((B, N, Cout), jnp.float32))
    out_specs_a.append(blk_act)
  out_shape_a.append(jax.ShapeDtypeStruct((n_stats, Cout), jnp.float32))
  out_specs_a.append(blk_full((n_stats, Cout)))

  res_a = pl.pallas_call(
      functools.partial(_conv1_kernel, Ho, Wo, stride, has_shortcut),
      grid=(B,),
      in_specs=in_a,
      out_specs=tuple(out_specs_a),
      out_shape=tuple(out_shape_a),
      compiler_params=cparams(("arbitrary",)),   # stats accumulate across grid
  )(*args_a)
  if has_shortcut:
    y1, ysc, stats_a = res_a
  else:
    y1, stats_a = res_a

  scale1, shift1 = _bn_affine(stats_a[0], stats_a[1], n_elems,
                              params["g1"], params["b1"])

  # ---- pass B: BN1 + ReLU + conv2 + BN2 statistics ----
  y2, stats_b = pl.pallas_call(
      functools.partial(_conv2_kernel, Ho, Wo),
      grid=(B,),
      in_specs=[blk_act,
                blk_full((1, Cout)), blk_full((1, Cout)),
                blk_full((9 * Cout, Cout))],
      out_specs=(blk_act, blk_full((2, Cout))),
      out_shape=(jax.ShapeDtypeStruct((B, N, Cout), jnp.float32),
                 jax.ShapeDtypeStruct((2, Cout), jnp.float32)),
      scratch_shapes=[pltpu.VMEM((Ho + 2, Wo + 2, Cout), jnp.float32)],
      compiler_params=cparams(("arbitrary",)),
  )(y1, scale1.reshape(1, Cout), shift1.reshape(1, Cout), w2f)

  scale2, shift2 = _bn_affine(stats_b[0], stats_b[1], n_elems,
                              params["g2"], params["b2"])

  # ---- pass C: BN2 + shortcut-BN + add + ReLU (lane-dense layout) ----
  lane = Wo * Cout
  y2_d = y2.reshape(B, Ho, lane)            # same HBM buffer, denser view
  def tile_chan(v):                          # per-channel -> per-lane vector
    return jnp.tile(v, Wo).reshape(1, lane)

  blk_dense = pl.BlockSpec((None, Ho, lane), lambda b: (b, 0, 0))
  in_c = [blk_dense, blk_dense, blk_full((1, lane)), blk_full((1, lane))]
  if has_shortcut:
    scale_s, shift_s = _bn_affine(stats_a[2], stats_a[3], n_elems,
                                  params["gs"], params["bs"])
    args_c = [y2_d, ysc.reshape(B, Ho, lane),
              tile_chan(scale2), tile_chan(shift2),
              tile_chan(scale_s), tile_chan(shift_s)]
    in_c += [blk_full((1, lane)), blk_full((1, lane))]
  else:
    # identity path: add the original (f32) input unchanged
    args_c = [y2_d, x_nhwc.reshape(B, Ho, lane),
              tile_chan(scale2), tile_chan(shift2)]

  out_d = pl.pallas_call(
      functools.partial(_fuse_kernel, has_shortcut),
      grid=(B,),
      in_specs=in_c,
      out_specs=blk_dense,
      out_shape=jax.ShapeDtypeStruct((B, Ho, lane), jnp.float32),
      compiler_params=cparams(("parallel",)),
  )(*args_c)

  out_nhwc = out_d.reshape(B, Ho, Wo, Cout)
  return jnp.transpose(out_nhwc, (0, 3, 1, 2))


# -------------------------------- reference ----------------------------------
def _reference(x, params, stride, mxu_dtype=jnp.float32):
  """Pure-JAX reference (NCHW), mirrors the PyTorch forward.

  mxu_dtype=jnp.bfloat16 mirrors the kernel's mixed precision (bf16 matmul
  operands, f32 accumulation / BN / elementwise).
  """
  def conv(z, w, s, p):
    return jax.lax.conv_general_dilated(
        z.astype(mxu_dtype), w.astype(mxu_dtype), (s, s), [(p, p), (p, p)],
        dimension_numbers=("NCHW", "OIHW", "NCHW"),
        preferred_element_type=jnp.float32)

  def bn(y, g, b):
    mean = y.mean(axis=(0, 2, 3), keepdims=True)
    var = ((y - mean) ** 2).mean(axis=(0, 2, 3), keepdims=True)
    return (y - mean) * jax.lax.rsqrt(var + _EPS) * g.reshape(1, -1, 1, 1) \
        + b.reshape(1, -1, 1, 1)

  Cout = params["w1"].shape[0]
  h1 = jax.nn.relu(bn(conv(x, params["w1"], stride, 1),
                      params["g1"], params["b1"]))
  out = bn(conv(h1, params["w2"], 1, 1), params["g2"], params["b2"])
  if stride != 1 or x.shape[1] != Cout:
    idn = bn(conv(x, params["ws"], stride, 0), params["gs"], params["bs"])
  else:
    idn = x
  return jax.nn.relu(out + idn)


if __name__ == "__main__":
  B, Cin, H, W = 2, 4, 16, 16
  Cout, stride = 8, 1                   # Cin != Cout -> 1x1-conv+BN shortcut

  key = jax.random.PRNGKey(0)
  ks = jax.random.split(key, 10)
  params = {
      "w1": 0.1 * jax.random.normal(ks[0], (Cout, Cin, 3, 3), jnp.float32),
      "g1": 1.0 + 0.1 * jax.random.normal(ks[1], (Cout,), jnp.float32),
      "b1": 0.1 * jax.random.normal(ks[2], (Cout,), jnp.float32),
      "w2": 0.1 * jax.random.normal(ks[3], (Cout, Cout, 3, 3), jnp.float32),
      "g2": 1.0 + 0.1 * jax.random.normal(ks[4], (Cout,), jnp.float32),
      "b2": 0.1 * jax.random.normal(ks[5], (Cout,), jnp.float32),
      "ws": 0.1 * jax.random.normal(ks[6], (Cout, Cin, 1, 1), jnp.float32),
      "gs": 1.0 + 0.1 * jax.random.normal(ks[7], (Cout,), jnp.float32),
      "bs": 0.1 * jax.random.normal(ks[8], (Cout,), jnp.float32),
  }
  x = jax.random.normal(ks[9], (B, Cin, H, W), jnp.float32)

  out = jax.block_until_ready(residual_block(x, params, stride=stride))
  ref = jax.block_until_ready(_reference(x, params, stride, _MXU_DTYPE))

  assert out.shape == (B, Cout, H // stride, W // stride)
  max_err = float(jnp.max(jnp.abs(out - ref)))
  assert max_err < 2e-3, f"max abs err {max_err}"
  print("KERNEL_OK")
</pallas_src>

<mosaic_0001>
module attributes {stable_mosaic.version = 11 : i64} {
  func.func @_conv1_kernel(%arg0: i32, %arg1: memref<1x18x18x4xf32, #tpu.memory_space<vmem>>, %arg2: memref<36x8xbf16, #tpu.memory_space<vmem>>, %arg3: memref<4x8xbf16, #tpu.memory_space<vmem>>, %arg4: memref<1x256x8xf32, #tpu.memory_space<vmem>>, %arg5: memref<1x256x8xf32, #tpu.memory_space<vmem>>, %arg6: memref<4x8xf32, #tpu.memory_space<vmem>>) attributes {dimension_semantics = [#tpu.dimension_semantics<arbitrary>], iteration_bounds = array<i64: 2>, scalar_prefetch = 0 : i64, scratch_operands = 0 : i64, tpu.core_type = #tpu.core_type<tc>, window_params = [{transform_indices = @transform_0, window_bounds = array<i64: 1, 18, 18, 4>}, {pipeline_mode = #tpu.pipeline_mode<synchronous>, transform_indices = @transform_1, window_bounds = array<i64: 36, 8>}, {pipeline_mode = #tpu.pipeline_mode<synchronous>, transform_indices = @transform_2, window_bounds = array<i64: 4, 8>}, {transform_indices = @transform_3, window_bounds = array<i64: 1, 256, 8>}, {transform_indices = @transform_4, window_bounds = array<i64: 1, 256, 8>}, {pipeline_mode = #tpu.pipeline_mode<synchronous>, transform_indices = @transform_5, window_bounds = array<i64: 4, 8>}]} {
    %c0 = arith.constant 0 : index
    %c0_0 = arith.constant 0 : index
    %c0_1 = arith.constant 0 : index
    %c0_2 = arith.constant 0 : index
    %0 = vector.load %arg1[%c0, %c0_0, %c0_1, %c0_2] : memref<1x18x18x4xf32, #tpu.memory_space<vmem>>, vector<1x16x16x4xf32>
    %1 = vector.shape_cast %0 : vector<1x16x16x4xf32> to vector<16x16x4xf32>
    %2 = vector.shape_cast %1 : vector<16x16x4xf32> to vector<256x4xf32>
    %c0_3 = arith.constant 0 : index
    %c0_4 = arith.constant 0 : index
    %c1 = arith.constant 1 : index
    %c0_5 = arith.constant 0 : index
    %3 = vector.load %arg1[%c0_3, %c0_4, %c1, %c0_5] : memref<1x18x18x4xf32, #tpu.memory_space<vmem>>, vector<1x16x16x4xf32>
    %4 = vector.shape_cast %3 : vector<1x16x16x4xf32> to vector<16x16x4xf32>
    %5 = vector.shape_cast %4 : vector<16x16x4xf32> to vector<256x4xf32>
    %c0_6 = arith.constant 0 : index
    %c0_7 = arith.constant 0 : index
    %c2 = arith.constant 2 : index
    %c0_8 = arith.constant 0 : index
    %6 = vector.load %arg1[%c0_6, %c0_7, %c2, %c0_8] : memref<1x18x18x4xf32, #tpu.memory_space<vmem>>, vector<1x16x16x4xf32>
    %7 = vector.shape_cast %6 : vector<1x16x16x4xf32> to vector<16x16x4xf32>
    %8 = vector.shape_cast %7 : vector<16x16x4xf32> to vector<256x4xf32>
    %c0_9 = arith.constant 0 : index
    %c1_10 = arith.constant 1 : index
    %c0_11 = arith.constant 0 : index
    %c0_12 = arith.constant 0 : index
    %9 = vector.load %arg1[%c0_9, %c1_10, %c0_11, %c0_12] : memref<1x18x18x4xf32, #tpu.memory_space<vmem>>, vector<1x16x16x4xf32>
    %10 = vector.shape_cast %9 : vector<1x16x16x4xf32> to vector<16x16x4xf32>
    %11 = vector.shape_cast %10 : vector<16x16x4xf32> to vector<256x4xf32>
    %c0_13 = arith.constant 0 : index
    %c1_14 = arith.constant 1 : index
    %c1_15 = arith.constant 1 : index
    %c0_16 = arith.constant 0 : index
    %12 = vector.load %arg1[%c0_13, %c1_14, %c1_15, %c0_16] : memref<1x18x18x4xf32, #tpu.memory_space<vmem>>, vector<1x16x16x4xf32>
    %13 = vector.shape_cast %12 : vector<1x16x16x4xf32> to vector<16x16x4xf32>
    %14 = vector.shape_cast %13 : vector<16x16x4xf32> to vector<256x4xf32>
    %c0_17 = arith.constant 0 : index
    %c1_18 = arith.constant 1 : index
    %c2_19 = arith.constant 2 : index
    %c0_20 = arith.constant 0 : index
    %15 = vector.load %arg1[%c0_17, %c1_18, %c2_19, %c0_20] : memref<1x18x18x4xf32, #tpu.memory_space<vmem>>, vector<1x16x16x4xf32>
    %16 = vector.shape_cast %15 : vector<1x16x16x4xf32> to vector<16x16x4xf32>
    %17 = vector.shape_cast %16 : vector<16x16x4xf32> to vector<256x4xf32>
    %c0_21 = arith.constant 0 : index
    %c2_22 = arith.constant 2 : index
    %c0_23 = arith.constant 0 : index
    %c0_24 = arith.constant 0 : index
    %18 = vector.load %arg1[%c0_21, %c2_22, %c0_23, %c0_24] : memref<1x18x18x4xf32, #tpu.memory_space<vmem>>, vector<1x16x16x4xf32>
    %19 = vector.shape_cast %18 : vector<1x16x16x4xf32> to vector<16x16x4xf32>
    %20 = vector.shape_cast %19 : vector<16x16x4xf32> to vector<256x4xf32>
    %c0_25 = arith.constant 0 : index
    %c2_26 = arith.constant 2 : index
    %c1_27 = arith.constant 1 : index
    %c0_28 = arith.constant 0 : index
    %21 = vector.load %arg1[%c0_25, %c2_26, %c1_27, %c0_28] : memref<1x18x18x4xf32, #tpu.memory_space<vmem>>, vector<1x16x16x4xf32>
    %22 = vector.shape_cast %21 : vector<1x16x16x4xf32> to vector<16x16x4xf32>
    %23 = vector.shape_cast %22 : vector<16x16x4xf32> to vector<256x4xf32>
    %c0_29 = arith.constant 0 : index
    %c2_30 = arith.constant 2 : index
    %c2_31 = arith.constant 2 : index
    %c0_32 = arith.constant 0 : index
    %24 = vector.load %arg1[%c0_29, %c2_30, %c2_31, %c0_32] : memref<1x18x18x4xf32, #tpu.memory_space<vmem>>, vector<1x16x16x4xf32>
    %25 = vector.shape_cast %24 : vector<1x16x16x4xf32> to vector<16x16x4xf32>
    %26 = vector.shape_cast %25 : vector<16x16x4xf32> to vector<256x4xf32>
    %27 = tpu.concatenate %2, %5, %8, %11, %14, %17, %20, %23, %26 in 1 : vector<256x4xf32>, vector<256x4xf32>, vector<256x4xf32>, vector<256x4xf32>, vector<256x4xf32>, vector<256x4xf32>, vector<256x4xf32>, vector<256x4xf32>, vector<256x4xf32> -> vector<256x36xf32>
    %28 = arith.truncf %27 : vector<256x36xf32> to vector<256x36xbf16>
    %c0_33 = arith.constant 0 : index
    %c0_34 = arith.constant 0 : index
    %29 = vector.load %arg2[%c0_33, %c0_34] : memref<36x8xbf16, #tpu.memory_space<vmem>>, vector<36x8xbf16>
    %cst = arith.constant dense<0.000000e+00> : vector<256x8xf32>
    %30 = tpu.matmul %28, %29, %cst {dimension_numbers = #tpu.dot_dimension_numbers<[1], [0], [0], [1], [0, 0, 1, 1], [], []>} : vector<256x36xbf16>, vector<36x8xbf16>, vector<256x8xf32> -> vector<256x8xf32>
    %c0_35 = arith.constant 0 : index
    %c0_36 = arith.constant 0 : index
    %c0_37 = arith.constant 0 : index
    %31 = vector.load %arg4[%c0_35, %c0_36, %c0_37] : memref<1x256x8xf32, #tpu.memory_space<vmem>>, vector<1x256x8xf32>
    %32 = vector.shape_cast %31 : vector<1x256x8xf32> to vector<256x8xf32>
    %33 = vector.shape_cast %30 : vector<256x8xf32> to vector<1x256x8xf32>
    tpu.vector_store %arg4[%c0_35, %c0_36, %c0_37], %33 {strides = array<i32>} : memref<1x256x8xf32, #tpu.memory_space<vmem>>, vector<1x256x8xf32>,
    %cst_38 = arith.constant dense<0.000000e+00> : vector<8xf32>
    %34 = vector.multi_reduction <add>, %30, %cst_38 [0] : vector<256x8xf32> to vector<8xf32>
    %35 = vector.shape_cast %34 : vector<8xf32> to vector<1x8xf32>
    %36 = arith.mulf %30, %30 : vector<256x8xf32>
    %cst_39 = arith.constant dense<0.000000e+00> : vector<8xf32>
    %37 = vector.multi_reduction <add>, %36, %cst_39 [0] : vector<256x8xf32> to vector<8xf32>
    %38 = vector.shape_cast %37 : vector<8xf32> to vector<1x8xf32>
    %39 = arith.truncf %14 : vector<256x4xf32> to vector<256x4xbf16>
    %c0_40 = arith.constant 0 : index
    %c0_41 = arith.constant 0 : index
    %40 = vector.load %arg3[%c0_40, %c0_41] : memref<4x8xbf16, #tpu.memory_space<vmem>>, vector<4x8xbf16>
    %cst_42 = arith.constant dense<0.000000e+00> : vector<256x8xf32>
    %41 = tpu.matmul %39, %40, %cst_42 {dimension_numbers = #tpu.dot_dimension_numbers<[1], [0], [0], [1], [0, 0, 1, 1], [], []>} : vector<256x4xbf16>, vector<4x8xbf16>, vector<256x8xf32> -> vector<256x8xf32>
    %c0_43 = arith.constant 0 : index
    %c0_44 = arith.constant 0 : index
    %c0_45 = arith.constant 0 : index
    %42 = vector.load %arg5[%c0_43, %c0_44, %c0_45] : memref<1x256x8xf32, #tpu.memory_space<vmem>>, vector<1x256x8xf32>
    %43 = vector.shape_cast %42 : vector<1x256x8xf32> to vector<256x8xf32>
    %44 = vector.shape_cast %41 : vector<256x8xf32> to vector<1x256x8xf32>
    tpu.vector_store %arg5[%c0_43, %c0_44, %c0_45], %44 {strides = array<i32>} : memref<1x256x8xf32, #tpu.memory_space<vmem>>, vector<1x256x8xf32>,
    %cst_46 = arith.constant dense<0.000000e+00> : vector<8xf32>
    %45 = vector.multi_reduction <add>, %41, %cst_46 [0] : vector<256x8xf32> to vector<8xf32>
    %46 = vector.shape_cast %45 : vector<8xf32> to vector<1x8xf32>
    %47 = arith.mulf %41, %41 : vector<256x8xf32>
    %cst_47 = arith.constant dense<0.000000e+00> : vector<8xf32>
    %48 = vector.multi_reduction <add>, %47, %cst_47 [0] : vector<256x8xf32> to vector<8xf32>
    %49 = vector.shape_cast %48 : vector<8xf32> to vector<1x8xf32>
    %50 = tpu.concatenate %35, %38, %46, %49 in 0 : vector<1x8xf32>, vector<1x8xf32>, vector<1x8xf32>, vector<1x8xf32> -> vector<4x8xf32>
    %c0_i32 = arith.constant 0 : i32
    %51 = arith.cmpi eq, %arg0, %c0_i32 : i32
    %52 = arith.extui %51 : i1 to i32
    %c0_i32_48 = arith.constant 0 : i32
    %53 = arith.cmpi ne, %52, %c0_i32_48 : i32
    scf.if %53 {
      %cst_53 = arith.constant 0.000000e+00 : f32
      %57 = vector.broadcast %cst_53 : f32 to vector<4x8xf32>
      %c0_54 = arith.constant 0 : index
      %c0_55 = arith.constant 0 : index
      %58 = vector.load %arg6[%c0_54, %c0_55] : memref<4x8xf32, #tpu.memory_space<vmem>>, vector<4x8xf32>
      tpu.vector_store %arg6[%c0_54, %c0_55], %57 {strides = array<i32>} : memref<4x8xf32, #tpu.memory_space<vmem>>, vector<4x8xf32>,
    } else {
    }
    %c0_49 = arith.constant 0 : index
    %c0_50 = arith.constant 0 : index
    %54 = vector.load %arg6[%c0_49, %c0_50] : memref<4x8xf32, #tpu.memory_space<vmem>>, vector<4x8xf32>
    %55 = arith.addf %54, %50 : vector<4x8xf32>
    %c0_51 = arith.constant 0 : index
    %c0_52 = arith.constant 0 : index
    %56 = vector.load %arg6[%c0_51, %c0_52] : memref<4x8xf32, #tpu.memory_space<vmem>>, vector<4x8xf32>
    tpu.vector_store %arg6[%c0_51, %c0_52], %55 {strides = array<i32>} : memref<4x8xf32, #tpu.memory_space<vmem>>, vector<4x8xf32>,
    return
  }
  func.func @transform_0(%arg0: i32) -> (i32, i32, i32, i32) {
    %c0_i32 = arith.constant 0 : i32
    %c0_i32_0 = arith.constant 0 : i32
    %c0_i32_1 = arith.constant 0 : i32
    %c0_i32_2 = arith.constant 0 : i32
    return %arg0, %c0_i32, %c0_i32_0, %c0_i32_1 : i32, i32, i32, i32
  }
  func.func @transform_1(%arg0: i32) -> (i32, i32) {
    %c0_i32 = arith.constant 0 : i32
    %c0_i32_0 = arith.constant 0 : i32
    %c0_i32_1 = arith.constant 0 : i32
    return %c0_i32, %c0_i32_0 : i32, i32
  }
  func.func @transform_2(%arg0: i32) -> (i32, i32) {
    %c0_i32 = arith.constant 0 : i32
    %c0_i32_0 = arith.constant 0 : i32
    %c0_i32_1 = arith.constant 0 : i32
    return %c0_i32, %c0_i32_0 : i32, i32
  }
  func.func @transform_3(%arg0: i32) -> (i32, i32, i32) {
    %c0_i32 = arith.constant 0 : i32
    %c0_i32_0 = arith.constant 0 : i32
    %c0_i32_1 = arith.constant 0 : i32
    return %arg0, %c0_i32, %c0_i32_0 : i32, i32, i32
  }
  func.func @transform_4(%arg0: i32) -> (i32, i32, i32) {
    %c0_i32 = arith.constant 0 : i32
    %c0_i32_0 = arith.constant 0 : i32
    %c0_i32_1 = arith.constant 0 : i32
    return %arg0, %c0_i32, %c0_i32_0 : i32, i32, i32
  }
  func.func @transform_5(%arg0: i32) -> (i32, i32) {
    %c0_i32 = arith.constant 0 : i32
    %c0_i32_0 = arith.constant 0 : i32
    %c0_i32_1 = arith.constant 0 : i32
    return %c0_i32, %c0_i32_0 : i32, i32
  }
}

</mosaic_0001>

<bundles_post_ra>
// kernel: tpu_custom_call.1
= control target key start
LH: loop header
LB: loop body
LE: loop exit
PB: predicated region body
PF: predicated region fallthrough
CT: control target
= control target key end

     0   :  { %11 = vsyncpa [#allocation3], 0  ;;  %s3705_s18 = smov 0   ;;  %s5439_s0 = inlined_call_operand.vmem [shape: f32[2,18,18,4], index: 0, kind: input, shape index: {}]   ;;  %s5440_s1 = inlined_call_operand.vmem [shape: bf16[36,8], index: 1, kind: input, shape index: {}]   ;;  %s5441_s2 = inlined_call_operand.vmem [shape: bf16[4,8], index: 2, kind: input, shape index: {}]   ;;  %s5442_s3 = inlined_call_operand.vmem [shape: f32[2,256,8], index: 3, kind: output, shape index: {0}]   ;;  %s5443_s4 = inlined_call_operand.vmem [shape: f32[2,256,8], index: 4, kind: output, shape index: {1}]   ;;  %s5444_s5 = inlined_call_operand.hbm [shape: f32[4,8], index: 5, kind: output, shape index: {2}]  }
   0x1 LB: > { %s3711_s19 = sadd.s32 4294967295, %s3663_s18   ;;  %p2687_p0 = scmp.ge.s32.totalorder %s3663_s18, 1  ;;  %s3663_s18 = sphi %s3705_s18, %s17_s18  }
   0x2   : > { %p188_p1 = scmp.lt.s32.totalorder %s3663_s18, 3 }
   0x4   : > { %p189_p2 = pnand %p2687_p0, %p188_p1 }
   0x6   : > { %192 = sbr.rel (%p189_p2) target bundleno = 661 (0x295), region = 32 }
   0xb   : > { %p221_p3 = scmp.lt.s32.totalorder %s3711_s19, 1  ;;  %s3665_s25 = smov 4   ;;  %vm1551_vm0 = vcmask 31744   ;;  %vm1584_vm1 = vcmask 64512   ;;  %vm1617_vm2 = vcmask 97280   ;;  %vm1900_vm3 = vcmask 1041408  }
   0xc   : > { %s3666_s26 = smov 8   ;;  %s3667_s27 = smov 12   ;;  %vm1650_vm4 = vcmask 130048   ;;  %vm1683_vm5 = vcmask 162816   ;;  %vm1716_vm6 = vcmask 195584   ;;  %vm1749_vm7 = vcmask 228352  }
   0xd   : > { %s3717_s20 = scalar_select %p221_p3, %s3711_s19, 1  ;;  %vm1782_vm8 = vcmask 261120   ;;  %vm1851_vm9 = vcmask 293888   ;;  %vm2554_vm10 = vcmask 1040384   ;;  %vm2557_vm11 = vcmask 1042432  }
   0xe   : > { %s3668_s28 = smov 16   ;;  %s3669_s29 = smov 20  }
   0xf   : > { %s2938_s21 = smul.u32 432, %s3717_s20  ;;  %s3670_s7 = smov 32  }
  0x10   : > { %s3671_s8 = smov 28   ;;  %s3672_s9 = smov 24  }
  0x11   : > { %s3723_s24 = scalar_lea.vmem %s5439_s0, %s2938_s21  ;;  %s2930_s16 = sshll.u32 %s3717_s20, 8 }
  0x12   : > { %v3726_v0 = vld [vmem:[%s3723_s24 + $0x61] sm:$0xff]  ;;  %v3729_v1 = vld [vmem:[%s3723_s24 + $0x69] sm:$0xff]  ;;  %v3732_v2 = vld [vmem:[%s3723_s24 + $0x31] sm:$0xff]  ;;  %s4710_s22 = scalar_lea.vmem %s5443_s4, %s2930_s16  ;;  %p2925_p4 = scmp.ne.s32.totalorder %s3711_s19, 0 }
  0x13   : > { %5469 = vst [vmem:[#allocation5_spill] sm:$0xff] %v3726_v0  ;;  %v3736_v3 = vpack.i.bf16 %v3729_v1, %v3726_v0  ;;  %v3739_v4 = vld [vmem:[%s3723_s24 + $0x39] sm:$0xff]  ;;  %v269_v5 = vld [vmem:[%s3723_s24 + $0x1] sm:$0xff]  ;;  %v270_v6 = vld [vmem:[%s3723_s24 + $0x9] sm:$0xff] }
  0x14   : > { %5470 = vst [vmem:[#allocation6_spill] sm:$0xff] %v3729_v1  ;;  %v3745_v7 = vpack.i.bf16 %v3739_v4, %v3732_v2  ;;  %v2963_v8 = vpack.i.bf16 %v270_v6, %v269_v5  ;;  %v279_v9 = vld [vmem:[%s3723_s24 + $0x79] sm:$0xff]  ;;  %v280_v10 = vld [vmem:[%s3723_s24 + $0x81] sm:$0xff]  ;;  %v3755_v11 = vld [vmem:[%s3723_s24 + $0x49] sm:$0xff] }
  0x15   : > { %5471 = vst [vmem:[#allocation7_spill] sm:$0xff] %v3732_v2  ;;  %2984 = vrot.lane.b32.xlu2 %v3736_v3, %s3665_s25  ;;  %v3758_v12 = vld [vmem:[%s3723_s24 + $0x51] sm:$0xff]  ;;  %v3761_v13 = vld [vmem:[%s3723_s24 + $0x19] sm:$0xff]  ;;  %v3764_v14 = vld [vmem:[%s3723_s24 + $0x21] sm:$0xff]  ;;  %v3766_v15 = vpack.i.bf16 %v280_v10, %v279_v9 }
  0x16   : > { %5472 = vst [vmem:[#allocation8_spill] sm:$0xff] %v3739_v4  ;;  %2974 = vrot.lane.b32.xlu1 %v3745_v7, %s3665_s25  ;;  %2964 = vrot.lane.b32.xlu0 %v2963_v8, %s3665_s25  ;;  %v3770_v16 = vpack.i.bf16 %v3758_v12, %v3755_v11  ;;  %v3774_v17 = vpack.i.bf16 %v3764_v14, %v3761_v13  ;;  %v285_v18 = vld [vmem:[%s3723_s24 + $0xc1] sm:$0xff]  ;;  %v286_v19 = vld [vmem:[%s3723_s24 + $0xc9] sm:$0xff] }
  0x17   : > { %5473 = vst [vmem:[#allocation9_spill] sm:$0xff] %v3755_v11  ;;  %v283_v20 = vld [vmem:[%s3723_s24 + $0xa9] sm:$0xff]  ;;  %v284_v21 = vld [vmem:[%s3723_s24 + $0xb1] sm:$0xff]  ;;  %v282_v23 = vld [vmem:[%s3723_s24 + $0x99] sm:$0xff]  ;;  %v3788_v24 = vpack.i.bf16 %v286_v19, %v285_v18 }
  0x18   : > { %5474 = vst [vmem:[#allocation10_spill] sm:$0xff] %v3758_v12  ;;  %v281_v22 = vld [vmem:[%s3723_s24 + $0x91] sm:$0xff]  ;;  %v3790_v25 = vpack.i.bf16 %v284_v21, %v283_v20  ;;  %v291_v27 = vld [vmem:[%s3723_s24 + $0x109] sm:$0xff]  ;;  %v3806_v30 = vld [vmem:[%s3723_s24 + $0xf9] sm:$0xff] }
  0x19   : > { %v3792_v26 = vpack.i.bf16 %v282_v23, %v281_v22  ;;  %v292_v28 = vld [vmem:[%s3723_s24 + $0x111] sm:$0xff]  ;;  %5476 = vst [vmem:[#allocation12_spill] sm:$0xff] %v3806_v30  ;;  %v287_v31 = vld [vmem:[%s3723_s24 + $0xd9] sm:$0xff]  ;;  %v288_v32 = vld [vmem:[%s3723_s24 + $0xe1] sm:$0xff] }
  0x1a   : > { %v3803_v29 = vld [vmem:[%s3723_s24 + $0xf1] sm:$0xff]  ;;  %v3810_v33 = vpack.i.bf16 %v292_v28, %v291_v27  ;;  %v3816_v35 = vpack.i.bf16 %v288_v32, %v287_v31  ;;  %v298_v37 = vld [vmem:[%s3723_s24 + $0x159] sm:$0xff]  ;;  %v296_v39 = vld [vmem:[%s3723_s24 + $0x141] sm:$0xff] }
  0x1b   : > { %5475 = vst [vmem:[#allocation11_spill] sm:$0xff] %v3803_v29  ;;  %v3814_v34 = vpack.i.bf16 %v3806_v30, %v3803_v29  ;;  %v297_v36 = vld [vmem:[%s3723_s24 + $0x151] sm:$0xff]  ;;  %v295_v38 = vld [vmem:[%s3723_s24 + $0x139] sm:$0xff]  ;;  %v293_v40 = vld [vmem:[%s3723_s24 + $0x121] sm:$0xff] }
  0x1c   : > { %v294_v41 = vld [vmem:[%s3723_s24 + $0x129] sm:$0xff]  ;;  %v3830_v42 = vpack.i.bf16 %v298_v37, %v297_v36  ;;  %v3832_v43 = vpack.i.bf16 %v296_v39, %v295_v38  ;;  %v303_v45 = vld [vmem:[%s3723_s24 + $0x1a] sm:$0xff]  ;;  %v300_v50 = vld [vmem:[%s3723_s24 + $0x171] sm:$0xff] }
  0x1d   : > { %2989 = vrot.lane.b32.xlu2 %v3766_v15, %s3665_s25  ;;  %v3834_v44 = vpack.i.bf16 %v294_v41, %v293_v40  ;;  %v304_v46 = vld [vmem:[%s3723_s24 + $0x22] sm:$0xff]  ;;  %v302_v48 = vld [vmem:[%s3723_s24 + $0xa] sm:$0xff]  ;;  %v308_v57 = vld [vmem:[%s3723_s24 + $0x52] sm:$0xff] }
  0x1e   : > { %2979 = vrot.lane.b32.xlu1 %v3770_v16, %s3665_s25  ;;  %2969 = vrot.lane.b32.xlu0 %v3774_v17, %s3665_s25  ;;  %v301_v47 = vld [vmem:[%s3723_s24 + $0x2] sm:$0xff]  ;;  %v3848_v51 = vpack.i.bf16 %v304_v46, %v303_v45  ;;  %v310_v55 = vld [vmem:[%s3723_s24 + $0x6a] sm:$0xff] }
  0x1f   : > { %v299_v49 = vld [vmem:[%s3723_s24 + $0x169] sm:$0xff]  ;;  %v3043_v52 = vpack.i.bf16 %v302_v48, %v301_v47  ;;  %v305_v58 = vld [vmem:[%s3723_s24 + $0x32] sm:$0xff]  ;;  %v306_v59 = vld [vmem:[%s3723_s24 + $0x3a] sm:$0xff] }
  0x20   : > { %v3850_v53 = vpack.i.bf16 %v300_v50, %v299_v49  ;;  %v309_v54 = vld [vmem:[%s3723_s24 + $0x62] sm:$0xff]  ;;  %v307_v56 = vld [vmem:[%s3723_s24 + $0x4a] sm:$0xff]  ;;  %v3867_v62 = vpack.i.bf16 %v306_v59, %v305_v58  ;;  %v316_v5 = vld [vmem:[%s3723_s24 + $0xb2] sm:$0xff] }
  0x21   : > { %v3863_v60 = vpack.i.bf16 %v310_v55, %v309_v54  ;;  %v3865_v61 = vpack.i.bf16 %v308_v57, %v307_v56  ;;  %v315_v63 = vld [vmem:[%s3723_s24 + $0xaa] sm:$0xff]  ;;  %v313_v6 = vld [vmem:[%s3723_s24 + $0x92] sm:$0xff]  ;;  %v314_v8 = vld [vmem:[%s3723_s24 + $0x9a] sm:$0xff] }
  0x22   : > { %v311_v9 = vld [vmem:[%s3723_s24 + $0x7a] sm:$0xff]  ;;  %v312_v10 = vld [vmem:[%s3723_s24 + $0x82] sm:$0xff]  ;;  %v3881_v18 = vpack.i.bf16 %v316_v5, %v315_v63  ;;  %v3883_v19 = vpack.i.bf16 %v314_v8, %v313_v6  ;;  %v3890_v21 = vld [vmem:[%s3723_s24 + $0xf2] sm:$0xff] }
  0x23   : > { %v3885_v20 = vpack.i.bf16 %v312_v10, %v311_v9  ;;  %5479 = vst [vmem:[#allocation15_spill] sm:$0xff] %v3890_v21  ;;  %v322_v22 = vld [vmem:[%s3723_s24 + $0xfa] sm:$0xff]  ;;  %v3901_v27 = vld [vmem:[%s3723_s24 + $0xe2] sm:$0xff]  ;;  %v318_v31 = vld [vmem:[%s3723_s24 + $0xca] sm:$0xff] }
  0x24   : > { %5477 = vst [vmem:[#allocation13_spill] sm:$0xff] %v3881_v18  ;;  %v3898_v23 = vld [vmem:[%s3723_s24 + $0xda] sm:$0xff]  ;;  %v3904_v28 = vld [vmem:[%s3723_s24 + $0xc2] sm:$0xff]  ;;  %v3908_v32 = vpack.i.bf16 %v322_v22, %v3890_v21  ;;  %v326_v41 = vld [vmem:[%s3723_s24 + $0x12a] sm:$0xff] }
  0x25   : > { %3004 = vrot.lane.b32.xlu2 %v3788_v24, %s3665_s25  ;;  %5478 = vst [vmem:[#allocation14_spill] sm:$0xff] %v3883_v19  ;;  %v3088_v36 = vpack.i.bf16 %v3901_v27, %v3898_v23  ;;  %v3083_v37 = vpack.i.bf16 %v318_v31, %v3904_v28  ;;  %v327_v38 = vld [vmem:[%s3723_s24 + $0x13a] sm:$0xff]  ;;  %v328_v39 = vld [vmem:[%s3723_s24 + $0x142] sm:$0xff]  ;;  %v3922_v45 = vld [vmem:[%s3723_s24 + $0x10a] sm:$0xff] }
  0x26   : > { %2999 = vrot.lane.b32.xlu1 %v3790_v25, %s3665_s25  ;;  %2994 = vrot.lane.b32.xlu0 %v3792_v26, %s3665_s25  ;;  %5480 = vst [vmem:[#allocation16_spill] sm:$0xff] %v3901_v27  ;;  %v325_v40 = vld [vmem:[%s3723_s24 + $0x122] sm:$0xff]  ;;  %v324_v46 = vld [vmem:[%s3723_s24 + $0x112] sm:$0xff]  ;;  %v3108_v47 = vpack.i.bf16 %v328_v39, %v327_v38 }
  0x27   : > { %5481 = vst [vmem:[#allocation17_spill] sm:$0xff] %v3908_v32  ;;  %v3103_v48 = vpack.i.bf16 %v326_v41, %v325_v40  ;;  %v3098_v49 = vpack.i.bf16 %v324_v46, %v3922_v45  ;;  %v3928_v50 = vld [vmem:[%s3723_s24 + $0x18] sm:$0xff]  ;;  %v331_v54 = vld [vmem:[%s3723_s24 + $0x16a] sm:$0xff]  ;;  %v2699_v5 = vld [vmem:[%s3723_s24 + $0x60] sm:$0xff] }
  0x28   : > { %5482 = vst [vmem:[#allocation18_spill] sm:$0xff] %v3922_v45  ;;  %v332_v55 = vld [vmem:[%s3723_s24 + $0x172] sm:$0xff]  ;;  %v330_v57 = vld [vmem:[%s3723_s24 + $0x15a] sm:$0xff]  ;;  %v2700_v6 = vld [vmem:[%s3723_s24 + $0x68] sm:$0xff] }
  0x29   : > { %v329_v56 = vld [vmem:[%s3723_s24 + $0x152] sm:$0xff]  ;;  %v3118_v59 = vpack.i.bf16 %v332_v55, %v331_v54  ;;  %v3947_v8 = vld [vmem:[%s3723_s24 + $0x48] sm:$0xff]  ;;  %v3958_v31 = vpack.i.bf16 %v2700_v6, %v2699_v5 }
  0x2a   : > { %v3113_v63 = vpack.i.bf16 %v330_v57, %v329_v56  ;;  %v3950_v9 = vld [vmem:[%s3723_s24 + $0x50] sm:$0xff]  ;;  %v3956_v22 = vld [vmem:[%s3723_s24 + $0x38] sm:$0xff]  ;;  %v3971_v38 = vld [vmem:[%s3723_s24 + $0xa8] sm:$0xff] }
  0x2b   : > { %v3953_v10 = vld [vmem:[%s3723_s24 + $0x30] sm:$0xff]  ;;  %5483 = vst [vmem:[#allocation19_spill] sm:$0xff] %v3958_v31  ;;  %v3984_v46 = vld [vmem:[%s3723_s24 + $0x98] sm:$0xff] }
  0x2c   : > { %v3978_v39 = vld [vmem:[%s3723_s24 + $0xb0] sm:$0xff] }
  0x2d   : > { %3019 = vrot.lane.b32.xlu2 %v3810_v33, %s3665_s25  ;;  %v3981_v40 = vld [vmem:[%s3723_s24 + $0x90] sm:$0xff]  ;;  %v3153_v55 = vpack.i.bf16 %v3978_v39, %v3971_v38 }
  0x2e   : > { %3014 = vrot.lane.b32.xlu1 %v3814_v34, %s3665_s25  ;;  %3009 = vrot.lane.b32.xlu0 %v3816_v35, %s3665_s25 }
  0x35   : > { %3034 = vrot.lane.b32.xlu2 %v3830_v42, %s3665_s25 }
  0x36   : > { %3029 = vrot.lane.b32.xlu1 %v3832_v43, %s3665_s25  ;;  %3024 = vrot.lane.b32.xlu0 %v3834_v44, %s3665_s25 }
  0x3d   : > { %3049 = vrot.lane.b32.xlu2 %v3848_v51, %s3666_s26 }
  0x3e   : > { %3044 = vrot.lane.b32.xlu1 %v3043_v52, %s3666_s26  ;;  %3039 = vrot.lane.b32.xlu0 %v3850_v53, %s3665_s25  ;;  %v3933_v52 = vld [vmem:[%s3723_s24 + $0x20] sm:$0xff]  ;;  %s5146_s25 = scalar_lea.vmem %s5442_s3, %s2930_s16 }
  0x3f   : > { %v3123_v58 = vpack.i.bf16 %v3933_v52, %v3928_v50 }
  0x45   : > { %3064 = vrot.lane.b32.xlu2 %v3863_v60, %s3666_s26 }
  0x46   : > { %3059 = vrot.lane.b32.xlu1 %v3865_v61, %s3666_s26  ;;  %3054 = vrot.lane.b32.xlu0 %v3867_v62, %s3666_s26 }
  0x4d   : > { %3079 = vrot.lane.b32.xlu2 %v3881_v18, %s3666_s26 }
  0x4e   : > { %3074 = vrot.lane.b32.xlu1 %v3883_v19, %s3666_s26  ;;  %3069 = vrot.lane.b32.xlu0 %v3885_v20, %s3666_s26 }
  0x55   : > { %3094 = vrot.lane.b32.xlu2 %v3908_v32, %s3666_s26  ;;  %v4033_v32 = vld [vmem:[%s3723_s24 + $0x138] sm:$0xff] }
  0x56   : > { %3089 = vrot.lane.b32.xlu1 %v3088_v36, %s3666_s26  ;;  %3084 = vrot.lane.b32.xlu0 %v3083_v37, %s3666_s26  ;;  %v3962_v36 = vpack.i.bf16 %v3950_v9, %v3947_v8  ;;  %v3966_v37 = vpack.i.bf16 %v3956_v22, %v3953_v10 }
  0x58   : > { %5484 = vst [vmem:[#allocation20_spill] sm:$0xff] %v3962_v36 }
  0x59   : > { %5485 = vst [vmem:[#allocation21_spill] sm:$0xff] %v3966_v37 }
  0x5d   : > { %3109 = vrot.lane.b32.xlu2 %v3108_v47, %s3666_s26  ;;  %v2701_v47 = vld [vmem:[%s3723_s24 + $0x78] sm:$0xff] }
  0x5e   : > { %3104 = vrot.lane.b32.xlu1 %v3103_v48, %s3666_s26  ;;  %3099 = vrot.lane.b32.xlu0 %v3098_v49, %s3666_s26  ;;  %v2702_v48 = vld [vmem:[%s3723_s24 + $0x80] sm:$0xff] }
  0x65   : > { %3124 = vrot.lane.b32.xlu2 %v3123_v58, %s3667_s27  ;;  %v3148_v58 = vpack.i.bf16 %v3984_v46, %v3981_v40 }
  0x66   : > { %3119 = vrot.lane.b32.xlu1 %v3118_v59, %s3666_s26  ;;  %3114 = vrot.lane.b32.xlu0 %v3113_v63, %s3666_s26  ;;  %v3998_v59 = vpack.i.bf16 %v2702_v48, %v2701_v47  ;;  %v4002_v63 = vld [vmem:[%s3723_s24 + $0xf0] sm:$0xff] }
  0x68   : > { %5486 = vst [vmem:[#allocation22_spill] sm:$0xff] %v3998_v59 }
  0x6d   : > { %3139 = vrot.lane.b32.xlu2 %v3958_v31, %s3667_s27  ;;  %v2714_v31 = vld [vmem:[%s3723_s24 + $0x110] sm:$0xff] }
  0x6e   : > { %3134 = vrot.lane.b32.xlu1 %v3962_v36, %s3667_s27  ;;  %3129 = vrot.lane.b32.xlu0 %v3966_v37, %s3667_s27  ;;  %v2723_v36 = vld [vmem:[%s3723_s24 + $0x180] sm:$0xff]  ;;  %v2720_v37 = vld [vmem:[%s3723_s24 + $0x158] sm:$0xff] }
  0x6f   : > { %v2985_v41 = vpop.permute.xlu2 %2984 }
  0x70   : > { %v2987_v49 = vunpack.i.h.bf16 %v2985_v41  ;;  %v2986_v54 = vunpack.i.l.bf16 %v2985_v41  ;;  %v4011_v41 = vld [vmem:[%s3723_s24 + $0xd8] sm:$0xff] }
  0x72   : > { %v3991_v56 = vsel %vm1551_vm0, %v2699_v5, %v2986_v54  ;;  %v3994_v57 = vsel %vm1551_vm0, %v2700_v6, %v2987_v49  ;;  %v4008_v5 = vld [vmem:[%s3723_s24 + $0xf8] sm:$0xff]  ;;  %v4014_v49 = vld [vmem:[%s3723_s24 + $0xe0] sm:$0xff] }
  0x73   : > { %5487 = vst [vmem:[#allocation23_spill] sm:$0xff] %v4014_v49  ;;  %v2707_v54 = vld [vmem:[%s3723_s24 + $0xc0] sm:$0xff]  ;;  %v4020_v29 = vpack.i.bf16 %v4008_v5, %v4002_v63  ;;  %v3163_v0 = vpack.i.bf16 %v4014_v49, %v4011_v41 }
  0x75   : > { %3154 = vrot.lane.b32.xlu2 %v3153_v55, %s3667_s27  ;;  %v2708_v55 = vld [vmem:[%s3723_s24 + $0xc8] sm:$0xff]  ;;  %5488 = vst [vmem:[#allocation24_spill] sm:$0xff] %v4020_v29 }
  0x76   : > { %3149 = vrot.lane.b32.xlu1 %v3148_v58, %s3667_s27  ;;  %3144 = vrot.lane.b32.xlu0 %v3998_v59, %s3667_s27  ;;  %v3158_v45 = vpack.i.bf16 %v2708_v55, %v2707_v54 }
  0x77   : > { %v2990_v6 = vpop.permute.xlu2 %2989 }
  0x78   : > { %v2992_v30 = vunpack.i.h.bf16 %v2990_v6  ;;  %v2991_v58 = vunpack.i.l.bf16 %v2990_v6  ;;  %v4038_v6 = vld [vmem:[%s3723_s24 + $0x140] sm:$0xff] }
  0x7a   : > { %v4023_v59 = vsel %vm1551_vm0, %v2701_v47, %v2991_v58  ;;  %v4026_v1 = vsel %vm1551_vm0, %v2702_v48, %v2992_v30  ;;  %v4041_v47 = vld [vmem:[%s3723_s24 + $0x120] sm:$0xff]  ;;  %v4044_v48 = vld [vmem:[%s3723_s24 + $0x128] sm:$0xff] }
  0x7b   : > { %5489 = vst [vmem:[#allocation25_spill] sm:$0xff] %v4041_v47  ;;  %v2713_v58 = vld [vmem:[%s3723_s24 + $0x108] sm:$0xff]  ;;  %v4058_v21 = vpack.i.bf16 %v4044_v48, %v4041_v47 }
  0x7c   : > { %5490 = vst [vmem:[#allocation26_spill] sm:$0xff] %v4044_v48  ;;  %v4060_v27 = vpack.i.bf16 %v2714_v31, %v2713_v58 }
  0x7d   : > { %3169 = vrot.lane.b32.xlu2 %v4020_v29, %s3667_s27  ;;  %5493 = vst [vmem:[#allocation29_spill] sm:$0xff] %v4058_v21 }
  0x7e   : > { %3164 = vrot.lane.b32.xlu1 %v3163_v0, %s3667_s27  ;;  %3159 = vrot.lane.b32.xlu0 %v3158_v45, %s3667_s27  ;;  %v3183_v0 = vpack.i.bf16 %v4038_v6, %v4033_v32  ;;  %5494 = vst [vmem:[#allocation30_spill] sm:$0xff] %v4060_v27 }
  0x7f   : > { %v3005_v30 = vpop.permute.xlu2 %3004 }
  0x80   : > { %v3007_v29 = vunpack.i.h.bf16 %v3005_v30  ;;  %v3006_v12 = vunpack.i.l.bf16 %v3005_v30  ;;  %v2719_v30 = vld [vmem:[%s3723_s24 + $0x150] sm:$0xff] }
  0x82   : > { %v4051_v45 = vsel %vm1551_vm0, %v2707_v54, %v3006_v12  ;;  %v4054_v11 = vsel %vm1551_vm0, %v2708_v55, %v3007_v29  ;;  %v2724_v12 = vld [vmem:[%s3723_s24 + $0x188] sm:$0xff]  ;;  %v4073_v55 = vld [vmem:[%s3723_s24 + $0x170] sm:$0xff] }
  0x83   : > { %5491 = vst [vmem:[#allocation27_spill] sm:$0xff] %v4051_v45  ;;  %v4070_v54 = vld [vmem:[%s3723_s24 + $0x168] sm:$0xff]  ;;  %v3198_v18 = vpack.i.bf16 %v2724_v12, %v2723_v36  ;;  %v3188_v45 = vpack.i.bf16 %v2720_v37, %v2719_v30 }
  0x84   : > { %5492 = vst [vmem:[#allocation28_spill] sm:$0xff] %v4054_v11  ;;  %v3193_v11 = vpack.i.bf16 %v4073_v55, %v4070_v54 }
  0x85   : > { %3184 = vrot.lane.b32.xlu2 %v3183_v0, %s3667_s27 }
  0x86   : > { %3179 = vrot.lane.b32.xlu1 %v4058_v21, %s3667_s27  ;;  %3174 = vrot.lane.b32.xlu0 %v4060_v27, %s3667_s27 }
  0x87   : > { %v3020_v29 = vpop.permute.xlu2 %3019 }
  0x88   : > { %v3022_v4 = vunpack.i.h.bf16 %v3020_v29  ;;  %v3021_v2 = vunpack.i.l.bf16 %v3020_v29  ;;  %v2975_v48 = vpop.permute.xlu1 %2974  ;;  %v4077_v47 = vpop.permute.xlu0 %2964 }
  0x89   : > { %v2977_v0 = vunpack.i.h.bf16 %v2975_v48  ;;  %v2976_v19 = vunpack.i.l.bf16 %v2975_v48 }
  0x8a   : > { %v4080_v21 = vsel %vm1551_vm0, %v2713_v58, %v3021_v2  ;;  %v4083_v27 = vsel %vm1551_vm0, %v2714_v31, %v3022_v4 }
  0x8b   : > { %v4089_v49 = vsel %vm1551_vm0, %v3953_v10, %v2976_v19  ;;  %v4093_v29 = vsel %vm1551_vm0, %v3956_v22, %v2977_v0 }
  0x8d   : > { %3199 = vrot.lane.b32.xlu2 %v3198_v18, %s3667_s27 }
  0x8e   : > { %3194 = vrot.lane.b32.xlu1 %v3193_v11, %s3667_s27  ;;  %3189 = vrot.lane.b32.xlu0 %v3188_v45, %s3667_s27 }
  0x8f   : > { %v3035_v2 = vpop.permute.xlu2 %3034 }
  0x90   : > { %v3037_v4 = vunpack.i.h.bf16 %v3035_v2  ;;  %v3036_v31 = vunpack.i.l.bf16 %v3035_v2  ;;  %v4098_v36 = vpop.permute.xlu1 %2979  ;;  %v2970_v48 = vpop.permute.xlu0 %2969 }
  0x91   : > { %v2972_v10 = vunpack.i.h.bf16 %v2970_v48  ;;  %v2971_v22 = vunpack.i.l.bf16 %v2970_v48 }
  0x92   : > { %v4101_v58 = vsel %vm1551_vm0, %v2719_v30, %v3036_v31  ;;  %v4104_v19 = vsel %vm1551_vm0, %v2720_v37, %v3037_v4 }
  0x93   : > { %v1554_v37 = vsel %vm1551_vm0, %v3928_v50, %v2971_v22  ;;  %v1555_v0 = vsel %vm1551_vm0, %v3933_v52, %v2972_v10 }
  0x95   : > { %3214 = vrot.lane.b32.xlu2 %v3770_v16, %s3668_s28 }
  0x96   : > { %3209 = vrot.lane.b32.xlu1 %v3745_v7, %s3668_s28  ;;  %3204 = vrot.lane.b32.xlu0 %v3774_v17, %s3668_s28 }
  0x97   : > { %v3050_v11 = vpop.permute.xlu2 %3049 }
  0x98   : > { %v3052_v18 = vunpack.i.h.bf16 %v3050_v11  ;;  %v3051_v45 = vunpack.i.l.bf16 %v3050_v11  ;;  %v3000_v12 = vpop.permute.xlu1 %2999  ;;  %v4112_v30 = vpop.permute.xlu0 %2994 }
  0x99   : > { %v3001_v11 = vunpack.i.l.bf16 %v3000_v12 }
  0x9a   : > { %v4119_v2 = vsel %vm1584_vm1, %v1554_v37, %v3051_v45  ;;  %v4122_v4 = vsel %vm1584_vm1, %v1555_v0, %v3052_v18  ;;  %v2967_v0 = vunpack.i.h.bf16 %v4077_v47 }
  0x9d   : > { %3229 = vrot.lane.b32.xlu2 %v3792_v26, %s3668_s28  ;;  %v3002_v26 = vunpack.i.h.bf16 %v3000_v12 }
  0x9e   : > { %3224 = vrot.lane.b32.xlu1 %v3766_v15, %s3668_s28  ;;  %3219 = vrot.lane.b32.xlu0 %v3736_v3, %s3668_s28 }
  0x9f   : > { %v3065_v17 = vpop.permute.xlu2 %3064 }
  0xa0   : > { %v3067_v50 = vunpack.i.h.bf16 %v3065_v17  ;;  %v3066_v31 = vunpack.i.l.bf16 %v3065_v17  ;;  %v3015_v48 = vpop.permute.xlu1 %3014  ;;  %v4130_v52 = vpop.permute.xlu0 %3009  ;;  %v2966_v17 = vunpack.i.l.bf16 %v4077_v47 }
  0xa1   : > { %v3016_v37 = vunpack.i.l.bf16 %v3015_v48 }
  0xa2   : > { %v4134_v10 = vsel %vm1584_vm1, %v3991_v56, %v3066_v31  ;;  %v4138_v22 = vsel %vm1584_vm1, %v3994_v57, %v3067_v50  ;;  %v1566_v57 = vsel %vm1551_vm0, %v3971_v38, %v3001_v11  ;;  %v237_v38 = vld [vmem:[%s3723_s24] sm:$0xff] }
  0xa5   : > { %3244 = vrot.lane.b32.xlu2 %v3816_v35, %s3668_s28  ;;  %v1567_v35 = vsel %vm1551_vm0, %v3978_v39, %v3002_v26  ;;  %v238_v39 = vld [vmem:[%s3723_s24 + $0x8] sm:$0xff] }
  0xa6   : > { %3239 = vrot.lane.b32.xlu1 %v3788_v24, %s3668_s28  ;;  %3234 = vrot.lane.b32.xlu0 %v3790_v25, %s3668_s28  ;;  %v3017_v25 = vunpack.i.h.bf16 %v3015_v48 }
  0xa7   : > { %v3080_v3 = vpop.permute.xlu2 %3079 }
  0xa8   : > { %v3082_v15 = vunpack.i.h.bf16 %v3080_v3  ;;  %v3081_v56 = vunpack.i.l.bf16 %v3080_v3  ;;  %v3030_v18 = vpop.permute.xlu1 %3029  ;;  %v4146_v45 = vpop.permute.xlu0 %3024  ;;  %v1573_v47 = vsel %vm1551_vm0, %v4008_v5, %v3017_v25 }
  0xa9   : > { %v3032_v25 = vunpack.i.h.bf16 %v3030_v18 }
  0xaa   : > { %v4153_v12 = vsel %vm1584_vm1, %v1566_v57, %v3081_v56  ;;  %v4156_v24 = vsel %vm1584_vm1, %v1567_v35, %v3082_v15  ;;  %v2981_v35 = vunpack.i.l.bf16 %v4098_v36 }
  0xad   : > { %3259 = vrot.lane.b32.xlu2 %v3834_v44, %s3668_s28  ;;  %v1572_v44 = vsel %vm1551_vm0, %v4002_v63, %v3016_v37  ;;  %v3031_v37 = vunpack.i.l.bf16 %v3030_v18 }
  0xae   : > { %3254 = vrot.lane.b32.xlu1 %v3810_v33, %s3668_s28  ;;  %3249 = vrot.lane.b32.xlu0 %v3814_v34, %s3668_s28  ;;  %v1552_v33 = vsel %vm1551_vm0, %v237_v38, %v2966_v17  ;;  %v1553_v34 = vsel %vm1551_vm0, %v238_v39, %v2967_v0  ;;  %v2982_v17 = vunpack.i.h.bf16 %v4098_v36  ;;  %v1558_v0 = vsel %vm1551_vm0, %v3947_v8, %v2981_v35  ;;  %v2755_v39 = vld [vmem:[%s3723_s24 + $0x181] sm:$0xff] }
  0xaf   : > { %v3095_v50 = vpop.permute.xlu2 %3094  ;;  %v1578_v18 = vsel %vm1551_vm0, %v4033_v32, %v3031_v37 }
  0xb0   : > { %v3097_v31 = vunpack.i.h.bf16 %v3095_v50  ;;  %v3096_v26 = vunpack.i.l.bf16 %v3095_v50  ;;  %v3045_v11 = vpop.permute.xlu1 %3044  ;;  %v4168_v48 = vpop.permute.xlu0 %3039  ;;  %v2756_v50 = vld [vmem:[%s3723_s24 + $0x189] sm:$0xff]  ;;  %v1559_v8 = vsel %vm1551_vm0, %v3950_v9, %v2982_v17  ;;  %v2996_v9 = vunpack.i.l.bf16 %v4112_v30 }
  0xb1   : > { %v3047_v3 = vunpack.i.h.bf16 %v3045_v11  ;;  %v3046_v15 = vunpack.i.l.bf16 %v3045_v11  ;;  %v3278_v32 = vpack.i.bf16 %v2756_v50, %v2755_v39 }
  0xb2   : > { %v4177_v56 = vsel %vm1584_vm1, %v1572_v44, %v3096_v26  ;;  %v4180_v57 = vsel %vm1584_vm1, %v1573_v47, %v3097_v31  ;;  %v1564_v37 = vsel %vm1551_vm0, %v3981_v40, %v2996_v9 }
  0xb3   : > { %v1585_v63 = vsel %vm1584_vm1, %v1552_v33, %v3046_v15  ;;  %v1586_v5 = vsel %vm1584_vm1, %v1553_v34, %v3047_v3 }
  0xb5   : > { %3274 = vrot.lane.b32.xlu2 %v3850_v53, %s3668_s28  ;;  %v1579_v53 = vsel %vm1551_vm0, %v4038_v6, %v3032_v25  ;;  %v2997_v25 = vunpack.i.h.bf16 %v4112_v30 }
  0xb6   : > { %3269 = vrot.lane.b32.xlu1 %v3830_v42, %s3668_s28  ;;  %3264 = vrot.lane.b32.xlu0 %v3832_v43, %s3668_s28 }
  0xb7   : > { %v3110_v38 = vpop.permute.xlu2 %3109 }
  0xb8   : > { %v3112_v31 = vunpack.i.h.bf16 %v3110_v38  ;;  %v3111_v36 = vunpack.i.l.bf16 %v3110_v38  ;;  %v3060_v26 = vpop.permute.xlu1 %3059  ;;  %v3055_v11 = vpop.permute.xlu0 %3054 }
  0xb9   : > { %v3062_v42 = vunpack.i.h.bf16 %v3060_v26  ;;  %v3061_v44 = vunpack.i.l.bf16 %v3060_v26  ;;  %v3057_v47 = vunpack.i.h.bf16 %v3055_v11  ;;  %v3056_v43 = vunpack.i.l.bf16 %v3055_v11 }
  0xba   : > { %v4203_v3 = vsel %vm1584_vm1, %v1578_v18, %v3111_v36  ;;  %v4206_v15 = vsel %vm1584_vm1, %v1579_v53, %v3112_v31  ;;  %v1565_v31 = vsel %vm1551_vm0, %v3984_v46, %v2997_v25  ;;  %v2195_v26 = vpack.c.bf16 %v3764_v14, %v3761_v13  ;;  %v5495_v25 = vld [vmem:[#allocation23_spill] sm:$0xff] }
  0xbb   : > { %v1591_v6 = vsel %vm1584_vm1, %v1558_v0, %v3061_v44  ;;  %v1592_v33 = vsel %vm1584_vm1, %v1559_v8, %v3062_v42  ;;  %v4212_v34 = vsel %vm1584_vm1, %v4089_v49, %v3056_v43  ;;  %v4216_v35 = vsel %vm1584_vm1, %v4093_v29, %v3057_v47  ;;  %v2211_v29 = vld [vmem:[%s5441_s2] sm:$0x3] }
  0xbc   : > { %v2261_v30 = vsel %vm1900_vm3, %v2211_v29, 0  ;;  %v3011_v13 = vunpack.i.l.bf16 %v4130_v52  ;;  %v3318_v43 = vpack.i.bf16 %v3898_v23, %v3904_v28  ;;  %v5496_v28 = vld [vmem:[#allocation27_spill] sm:$0xff] }
  0xbd   : > { %3289 = vrot.lane.b32.xlu2 %v3867_v62, %s3669_s29  ;;  %2270 = vmatpush.bf16.msra.mxu1 %v2261_v30 }
  0xbe   : > { %3284 = vrot.lane.b32.xlu1 %v3848_v51, %s3669_s29  ;;  %3279 = vrot.lane.b32.xlu0 %v3278_v32, %s3668_s28 }
  0xbf   : > { %v3125_v49 = vpop.permute.xlu2 %3124  ;;  %2937 = vmatpush.bf16.msra.mxu3 %v2261_v30 }
  0xc0   : > { %v3127_v17 = vunpack.i.h.bf16 %v3125_v49  ;;  %v3126_v0 = vunpack.i.l.bf16 %v3125_v49  ;;  %v3075_v38 = vpop.permute.xlu1 %3074  ;;  %v3070_v39 = vpop.permute.xlu0 %3069  ;;  %2909 = vmatmul.msk.bf16.vlgmr.msra.gmra.mxu1 %vm1551_vm0, %v2195_v26 }
  0xc1   : > { %v3077_v50 = vunpack.i.h.bf16 %v3075_v38  ;;  %v3076_v51 = vunpack.i.l.bf16 %v3075_v38  ;;  %v3072_v18 = vunpack.i.h.bf16 %v3070_v39  ;;  %v3071_v53 = vunpack.i.l.bf16 %v3070_v39  ;;  %v5499_v39 = vld [vmem:[#allocation14_spill] sm:$0xff] }
  0xc2   : > { %v4234_v36 = vsel %vm1617_vm2, %v1585_v63, %v3126_v0  ;;  %v4237_v40 = vsel %vm1617_vm2, %v1586_v5, %v3127_v17  ;;  %v3012_v63 = vunpack.i.h.bf16 %v4130_v52  ;;  %v1570_v52 = vsel %vm1551_vm0, %v4011_v41, %v3011_v13  ;;  %v5497_v0 = vld [vmem:[#allocation28_spill] sm:$0xff] }
  0xc3   : > { %v1597_v11 = vsel %vm1584_vm1, %v1564_v37, %v3076_v51  ;;  %v1598_v42 = vsel %vm1584_vm1, %v1565_v31, %v3077_v50  ;;  %v4245_v44 = vsel %vm1584_vm1, %v4023_v59, %v3071_v53  ;;  %v4249_v46 = vsel %vm1584_vm1, %v4026_v1, %v3072_v18  ;;  %v5500_v50 = vld [vmem:[#allocation25_spill] sm:$0xff] }
  0xc4   : > { %v3026_v38 = vunpack.i.l.bf16 %v4146_v45 }
  0xc5   : > { %3304 = vrot.lane.b32.xlu2 %v3885_v20, %s3669_s29 }
  0xc6   : > { %3299 = vrot.lane.b32.xlu1 %v3863_v60, %s3669_s29  ;;  %3294 = vrot.lane.b32.xlu0 %v3865_v61, %s3669_s29  ;;  %v1571_v60 = vsel %vm1551_vm0, %v5495_v25, %v3012_v63  ;;  %v1576_v51 = vsel %vm1551_vm0, %v5500_v50, %v3026_v38 }
  0xc7   : > { %v3140_v14 = vpop.permute.xlu2 %3139 }
  0xc8   : > { %v3142_v59 = vunpack.i.h.bf16 %v3140_v14  ;;  %v3141_v5 = vunpack.i.l.bf16 %v3140_v14  ;;  %v3090_v1 = vpop.permute.xlu1 %3089  ;;  %v3085_v47 = vpop.permute.xlu0 %3084 }
  0xc9   : > { %v3092_v8 = vunpack.i.h.bf16 %v3090_v1  ;;  %v3091_v20 = vunpack.i.l.bf16 %v3090_v1  ;;  %v3087_v32 = vunpack.i.h.bf16 %v3085_v47  ;;  %v3086_v9 = vunpack.i.l.bf16 %v3085_v47 }
  0xca   : > { %v4267_v49 = vsel %vm1617_vm2, %v1591_v6, %v3141_v5  ;;  %v4270_v29 = vsel %vm1617_vm2, %v1592_v33, %v3142_v59  ;;  %v3027_v6 = vunpack.i.h.bf16 %v4146_v45  ;;  %v5498_v33 = vld [vmem:[#allocation13_spill] sm:$0xff]  ;;  %v5501_v5 = vld [vmem:[#allocation26_spill] sm:$0xff] }
  0xcb   : > { %v1603_v37 = vsel %vm1584_vm1, %v1570_v52, %v3091_v20  ;;  %v1604_v23 = vsel %vm1584_vm1, %v1571_v60, %v3092_v8  ;;  %v4276_v17 = vsel %vm1584_vm1, %v5496_v28, %v3086_v9  ;;  %v4280_v41 = vsel %vm1584_vm1, %v5497_v0, %v3087_v32  ;;  %v5503_v8 = vld [vmem:[#allocation8_spill] sm:$0xff] }
  0xcc   : > { %v1577_v45 = vsel %vm1551_vm0, %v5501_v5, %v3027_v6 }
  0xcd   : > { %3319 = vrot.lane.b32.xlu2 %v3318_v43, %s3669_s29  ;;  %v5502_v43 = vld [vmem:[#allocation7_spill] sm:$0xff] }
  0xce   : > { %3314 = vrot.lane.b32.xlu1 %v5498_v33, %s3669_s29  ;;  %3309 = vrot.lane.b32.xlu0 %v5499_v39, %s3669_s29  ;;  %v2196_v20 = vpack.c.bf16 %v5503_v8, %v5502_v43  ;;  %v5506_v43 = vld [vmem:[#allocation16_spill] sm:$0xff]  ;;  %v5507_v8 = vld [vmem:[#allocation15_spill] sm:$0xff] }
  0xcf   : > { %v3155_v30 = vpop.permute.xlu2 %3154 }
  0xd0   : > { %v3157_v18 = vunpack.i.h.bf16 %v3155_v30  ;;  %v3156_v53 = vunpack.i.l.bf16 %v3155_v30  ;;  %v3105_v31 = vpop.permute.xlu1 %3104  ;;  %v3100_v26 = vpop.permute.xlu0 %3099  ;;  %2910 = vmatmul.msk.bf16.gmra.mxu1 %vm1551_vm0, %v2196_v20  ;;  %v3353_v20 = vpack.i.bf16 %v5507_v8, %v5506_v43 }
  0xd1   : > { %v3107_v63 = vunpack.i.h.bf16 %v3105_v31  ;;  %v3106_v13 = vunpack.i.l.bf16 %v3105_v31  ;;  %v3102_v14 = vunpack.i.h.bf16 %v3100_v26  ;;  %v3101_v59 = vunpack.i.l.bf16 %v3100_v26 }
  0xd2   : > { %v4294_v1 = vsel %vm1617_vm2, %v1597_v11, %v3156_v53  ;;  %v4297_v47 = vsel %vm1617_vm2, %v1598_v42, %v3157_v18  ;;  %v3042_v11 = vunpack.i.h.bf16 %v4168_v48  ;;  %v3041_v42 = vunpack.i.l.bf16 %v4168_v48 }
  0xd3   : > { %v1609_v32 = vsel %vm1584_vm1, %v1576_v51, %v3106_v13  ;;  %v1610_v9 = vsel %vm1584_vm1, %v1577_v45, %v3107_v63  ;;  %v4305_v52 = vsel %vm1584_vm1, %v4080_v21, %v3101_v59  ;;  %v4309_v25 = vsel %vm1584_vm1, %v4083_v27, %v3102_v14  ;;  %v5504_v21 = vld [vmem:[#allocation21_spill] sm:$0xff] }
  0xd4   : > { %v1582_v48 = vsel %vm1551_vm0, %v4070_v54, %v3041_v42  ;;  %v5509_v42 = vld [vmem:[#allocation10_spill] sm:$0xff] }
  0xd5   : > { %3334 = vrot.lane.b32.xlu2 %v3867_v62, %s3670_s7 }
  0xd6   : > { %3329 = vrot.lane.b32.xlu1 %v3745_v7, %s3671_s8  ;;  %3324 = vrot.lane.b32.xlu0 %v5504_v21, %s3672_s9  ;;  %v1583_v7 = vsel %vm1551_vm0, %v4073_v55, %v3042_v11  ;;  %v2837_v55 = vld [vmem:[%s3723_s24 + $0xf1] sm:$0xff]  ;;  %v5508_v11 = vld [vmem:[#allocation9_spill] sm:$0xff] }
  0xd7   : > { %v3170_v27 = vpop.permute.xlu2 %3169  ;;  %v2197_v21 = vpack.c.bf16 %v5509_v42, %v5508_v11 }
  0xd8   : > { %v3172_v60 = vunpack.i.h.bf16 %v3170_v27  ;;  %v3171_v28 = vunpack.i.l.bf16 %v3170_v27  ;;  %v3120_v0 = vpop.permute.xlu1 %3119  ;;  %v3115_v38 = vpop.permute.xlu0 %3114 }
  0xd9   : > { %v3122_v62 = vunpack.i.h.bf16 %v3120_v0  ;;  %v3121_v6 = vunpack.i.l.bf16 %v3120_v0  ;;  %v3117_v33 = vunpack.i.h.bf16 %v3115_v38  ;;  %v3116_v39 = vunpack.i.l.bf16 %v3115_v38  ;;  %v2826_v0 = vld [vmem:[%s3723_s24 + $0x69] sm:$0xff]  ;;  %v5510_v38 = vld [vmem:[#allocation24_spill] sm:$0xff] }
  0xda   : > { %v4325_v30 = vsel %vm1617_vm2, %v1603_v37, %v3171_v28  ;;  %v4328_v50 = vsel %vm1617_vm2, %v1604_v23, %v3172_v60  ;;  %v2838_v37 = vld [vmem:[%s3723_s24 + $0xf9] sm:$0xff] }
  0xdb   : > { %v1615_v51 = vsel %vm1584_vm1, %v1582_v48, %v3121_v6  ;;  %v1616_v18 = vsel %vm1584_vm1, %v1583_v7, %v3122_v62  ;;  %v4334_v53 = vsel %vm1584_vm1, %v4101_v58, %v3116_v39  ;;  %v4338_v54 = vsel %vm1584_vm1, %v4104_v19, %v3117_v33  ;;  %v5505_v23 = vld [vmem:[#allocation20_spill] sm:$0xff] }
  0xdc   : > { %v3363_v14 = vpack.i.bf16 %v2838_v37, %v2837_v55 }
  0xdd   : > { %3349 = vrot.lane.b32.xlu2 %v3865_v61, %s3670_s7 }
  0xde   : > { %3344 = vrot.lane.b32.xlu1 %v3770_v16, %s3671_s8  ;;  %3339 = vrot.lane.b32.xlu0 %v5505_v23, %s3672_s9 }
  0xdf   : > { %v3185_v31 = vpop.permute.xlu2 %3184 }
  0xe0   : > { %v3187_v26 = vunpack.i.h.bf16 %v3185_v31  ;;  %v3186_v63 = vunpack.i.l.bf16 %v3185_v31  ;;  %v3135_v58 = vpop.permute.xlu1 %3134  ;;  %v3130_v13 = vpop.permute.xlu0 %3129  ;;  %2911 = vmatmul.msk.bf16.gmra.mxu1 %vm1551_vm0, %v2197_v21 }
  0xe1   : > { %v3137_v19 = vunpack.i.h.bf16 %v3135_v58  ;;  %v3136_v59 = vunpack.i.l.bf16 %v3135_v58  ;;  %v3132_v5 = vunpack.i.h.bf16 %v3130_v13  ;;  %v3131_v61 = vunpack.i.l.bf16 %v3130_v13  ;;  %v5512_v58 = vld [vmem:[#allocation17_spill] sm:$0xff] }
  0xe2   : > { %v4349_v45 = vsel %vm1617_vm2, %v1609_v32, %v3186_v63  ;;  %v4352_v16 = vsel %vm1617_vm2, %v1610_v9, %v3187_v26  ;;  %v2825_v9 = vld [vmem:[%s3723_s24 + $0x61] sm:$0xff]  ;;  %v2858_v13 = vld [vmem:[%s3723_s24 + $0x6a] sm:$0xff] }
  0xe3   : > { %v1622_v27 = vsel %vm1617_vm2, %v4212_v34, %v3136_v59  ;;  %v1623_v60 = vsel %vm1617_vm2, %v4216_v35, %v3137_v19  ;;  %v4364_v28 = vsel %vm1617_vm2, %v4119_v2, %v3131_v61  ;;  %v4368_v32 = vsel %vm1617_vm2, %v4122_v4, %v3132_v5  ;;  %v5513_v5 = vld [vmem:[#allocation18_spill] sm:$0xff] }
  0xe4   : > { %v3378_v33 = vpack.i.bf16 %v2826_v0, %v2825_v9  ;;  %v5514_v9 = vld [vmem:[#allocation5_spill] sm:$0xff]  ;;  %v5515_v0 = vld [vmem:[#allocation6_spill] sm:$0xff] }
  0xe5   : > { %3364 = vrot.lane.b32.xlu2 %v3363_v14, %s3671_s8 }
  0xe6   : > { %3359 = vrot.lane.b32.xlu1 %v5510_v38, %s3672_s9  ;;  %3354 = vrot.lane.b32.xlu0 %v3353_v20, %s3669_s29  ;;  %v2198_v38 = vpack.c.bf16 %v5515_v0, %v5514_v9 }
  0xe7   : > { %v3200_v34 = vpop.permute.xlu2 %3199 }
  0xe8   : > { %v3202_v35 = vunpack.i.h.bf16 %v3200_v34  ;;  %v3201_v2 = vunpack.i.l.bf16 %v3200_v34  ;;  %v3150_v62 = vpop.permute.xlu1 %3149  ;;  %v3145_v6 = vpop.permute.xlu0 %3144 }
  0xe9   : > { %v3152_v4 = vunpack.i.h.bf16 %v3150_v62  ;;  %v3151_v39 = vunpack.i.l.bf16 %v3150_v62  ;;  %v3147_v48 = vunpack.i.h.bf16 %v3145_v6  ;;  %v3146_v7 = vunpack.i.l.bf16 %v3145_v6  ;;  %v2839_v6 = vld [vmem:[%s3723_s24 + $0x109] sm:$0xff] }
  0xea   : > { %v4378_v55 = vsel %vm1617_vm2, %v1615_v51, %v3201_v2  ;;  %v4381_v37 = vsel %vm1617_vm2, %v1616_v18, %v3202_v35  ;;  %v2776_v51 = vld [vmem:[%s3723_s24 + $0xfa] sm:$0xff] }
  0xeb   : > { %v1628_v23 = vsel %vm1617_vm2, %v4245_v44, %v3151_v39  ;;  %v1629_v31 = vsel %vm1617_vm2, %v4249_v46, %v3152_v4  ;;  %v4389_v26 = vsel %vm1617_vm2, %v4134_v10, %v3146_v7  ;;  %v4393_v63 = vsel %vm1617_vm2, %v4138_v22, %v3147_v48  ;;  %v5511_v18 = vld [vmem:[#allocation19_spill] sm:$0xff]  ;;  %v2857_v46 = vld [vmem:[%s3723_s24 + $0x62] sm:$0xff] }
  0xec   : > { %v3388_v22 = vpack.i.bf16 %v5513_v5, %v2776_v51  ;;  %v3383_v21 = vpack.i.bf16 %v2858_v13, %v2857_v46  ;;  %v5518_v7 = vld [vmem:[#allocation12_spill] sm:$0xff] }
  0xed   : > { %3379 = vrot.lane.b32.xlu2 %v3378_v33, %s3671_s8  ;;  %v2840_v33 = vld [vmem:[%s3723_s24 + $0x111] sm:$0xff] }
  0xee   : > { %3374 = vrot.lane.b32.xlu1 %v5511_v18, %s3672_s9  ;;  %3369 = vrot.lane.b32.xlu0 %v5512_v58, %s3670_s7 }
  0xef   : > { %v3215_v44 = vpop.permute.xlu2 %3214 }
  0xf0   : > { %v3217_v14 = vunpack.i.h.bf16 %v3215_v44  ;;  %v3216_v10 = vunpack.i.l.bf16 %v3215_v44  ;;  %v3165_v19 = vpop.permute.xlu1 %3164  ;;  %v3160_v59 = vpop.permute.xlu0 %3159  ;;  %2912 = vmatmul.msk.bf16.gmra.mxu1 %vm1551_vm0, %v2198_v38 }
  0xf1   : > { %v3167_v61 = vunpack.i.h.bf16 %v3165_v19  ;;  %v3166_v43 = vunpack.i.l.bf16 %v3165_v19  ;;  %v3162_v8 = vunpack.i.h.bf16 %v3160_v59  ;;  %v3161_v20 = vunpack.i.l.bf16 %v3160_v59 }
  0xf2   : > { %v4405_v11 = vsel %vm1650_vm4, %v1622_v27, %v3216_v10  ;;  %v4408_v42 = vsel %vm1650_vm4, %v1623_v60, %v3217_v14  ;;  %v5516_v60 = vld [vmem:[#allocation30_spill] sm:$0xff]  ;;  %v3398_v19 = vpack.i.bf16 %v2840_v33, %v2839_v6 }
  0xf3   : > { %v1634_v34 = vsel %vm1617_vm2, %v4276_v17, %v3166_v43  ;;  %v1635_v35 = vsel %vm1617_vm2, %v4280_v41, %v3167_v61  ;;  %v4418_v2 = vsel %vm1617_vm2, %v4153_v12, %v3161_v20  ;;  %v4422_v27 = vsel %vm1617_vm2, %v4156_v24, %v3162_v8  ;;  %v2871_v17 = vld [vmem:[%s3723_s24 + $0x10a] sm:$0xff]  ;;  %v2872_v41 = vld [vmem:[%s3723_s24 + $0x112] sm:$0xff]  ;;  %v2779_v61 = vld [vmem:[%s3723_s24 + $0x122] sm:$0xff] }
  0xf4   : > { %v5517_v24 = vld [vmem:[#allocation11_spill] sm:$0xff]  ;;  %v3403_v10 = vpack.i.bf16 %v2872_v41, %v2871_v17  ;;  %v2860_v8 = vld [vmem:[%s3723_s24 + $0x82] sm:$0xff]  ;;  %v3423_v0 = vpack.i.bf16 %v2779_v61, %v2872_v41 }
  0xf5   : > { %3394 = vrot.lane.b32.xlu2 %v5516_v60, %s3672_s9  ;;  %v2204_v51 = vpack.c.bf16 %v5518_v7, %v5517_v24  ;;  %v2859_v43 = vld [vmem:[%s3723_s24 + $0x7a] sm:$0xff] }
  0xf6   : > { %3389 = vrot.lane.b32.xlu1 %v3388_v22, %s3669_s29  ;;  %3384 = vrot.lane.b32.xlu0 %v3383_v21, %s3670_s7  ;;  %v3418_v38 = vpack.i.bf16 %v2860_v8, %v2859_v43 }
  0xf7   : > { %v3230_v62 = vpop.permute.xlu2 %3229  ;;  %2918 = vmatmul.msk.bf16.vlgmr.msra.gmra.mxu3 %vm1551_vm0, %v2204_v51  ;;  %v2841_v51 = vld [vmem:[%s3723_s24 + $0x121] sm:$0xff] }
  0xf8   : > { %v3232_v12 = vunpack.i.h.bf16 %v3230_v62  ;;  %v3231_v4 = vunpack.i.l.bf16 %v3230_v62  ;;  %v3180_v39 = vpop.permute.xlu1 %3179  ;;  %v3175_v48 = vpop.permute.xlu0 %3174 }
  0xf9   : > { %v3182_v18 = vunpack.i.h.bf16 %v3180_v39  ;;  %v3181_v58 = vunpack.i.l.bf16 %v3180_v39  ;;  %v3177_v44 = vunpack.i.h.bf16 %v3175_v48  ;;  %v3176_v46 = vunpack.i.l.bf16 %v3175_v48  ;;  %v3603_v39 = vld [vmem:[%s3723_s24 + $0x79] sm:$0xff]  ;;  %v3604_v48 = vld [vmem:[%s3723_s24 + $0x81] sm:$0xff] }
  0xfa   : > { %v4436_v13 = vsel %vm1650_vm4, %v1628_v23, %v3231_v4  ;;  %v4439_v14 = vsel %vm1650_vm4, %v1629_v31, %v3232_v12  ;;  %v5519_v31 = vld [vmem:[#allocation22_spill] sm:$0xff]  ;;  %v2199_v24 = vpack.c.bf16 %v3604_v48, %v3603_v39 }
  0xfb   : > { %v1640_v59 = vsel %vm1617_vm2, %v4305_v52, %v3181_v58  ;;  %v1641_v5 = vsel %vm1617_vm2, %v4309_v25, %v3182_v18  ;;  %v4448_v22 = vsel %vm1617_vm2, %v4177_v56, %v3176_v46  ;;  %v4452_v23 = vsel %vm1617_vm2, %v4180_v57, %v3177_v44  ;;  %v2827_v25 = vld [vmem:[%s3723_s24 + $0x79] sm:$0xff]  ;;  %v2828_v56 = vld [vmem:[%s3723_s24 + $0x81] sm:$0xff]  ;;  %v2842_v18 = vld [vmem:[%s3723_s24 + $0x129] sm:$0xff] }
  0xfc   : > { %v3413_v4 = vpack.i.bf16 %v2828_v56, %v2827_v25  ;;  %v3605_v46 = vld [vmem:[%s3723_s24 + $0x109] sm:$0xff]  ;;  %v3433_v56 = vpack.i.bf16 %v2842_v18, %v2841_v51 }
  0xfd   : > { %3409 = vrot.lane.b32.xlu2 %v5519_v31, %s3672_s9 }
  0xfe   : > { %3404 = vrot.lane.b32.xlu1 %v3403_v10, %s3670_s7  ;;  %3399 = vrot.lane.b32.xlu0 %v3398_v19, %s3671_s8  ;;  %v3606_v10 = vld [vmem:[%s3723_s24 + $0x111] sm:$0xff] }
  0xff   : > { %v3245_v52 = vpop.permute.xlu2 %3244  ;;  %v2205_v19 = vpack.c.bf16 %v3606_v10, %v3605_v46 }
 0x100   : > { %v3247_v20 = vunpack.i.h.bf16 %v3245_v52  ;;  %v3246_v21 = vunpack.i.l.bf16 %v3245_v52  ;;  %v3195_v9 = vpop.permute.xlu1 %3194  ;;  %v3190_v57 = vpop.permute.xlu0 %3189  ;;  %2913 = vmatmul.msk.bf16.gmra.mxu1 %vm1551_vm0, %v2199_v24 }
 0x101   : > { %v3197_v60 = vunpack.i.h.bf16 %v3195_v9  ;;  %v3196_v17 = vunpack.i.l.bf16 %v3195_v9  ;;  %v3192_v62 = vunpack.i.h.bf16 %v3190_v57  ;;  %v3191_v6 = vunpack.i.l.bf16 %v3190_v57  ;;  %v2861_v9 = vld [vmem:[%s3723_s24 + $0x92] sm:$0xff] }
 0x102   : > { %v4464_v33 = vsel %vm1650_vm4, %v1634_v34, %v3246_v21  ;;  %v4467_v12 = vsel %vm1650_vm4, %v1635_v35, %v3247_v20  ;;  %v2830_v57 = vld [vmem:[%s3723_s24 + $0x99] sm:$0xff] }
 0x103   : > { %v1646_v41 = vsel %vm1617_vm2, %v4334_v53, %v3196_v17  ;;  %v1647_v7 = vsel %vm1617_vm2, %v4338_v54, %v3197_v60  ;;  %v4477_v34 = vsel %vm1617_vm2, %v4203_v3, %v3191_v6  ;;  %v4481_v35 = vsel %vm1617_vm2, %v4206_v15, %v3192_v62  ;;  %v4488_v53 = vld [vmem:[%s3723_s24 + $0x12a] sm:$0xff] }
 0x104   : > { %v3438_v8 = vpack.i.bf16 %v4488_v53, %v2779_v61  ;;  %v2862_v61 = vld [vmem:[%s3723_s24 + $0x9a] sm:$0xff] }
 0x105   : > { %3424 = vrot.lane.b32.xlu2 %v3423_v0, %s3669_s29  ;;  %v3453_v6 = vpack.i.bf16 %v2862_v61, %v2861_v9  ;;  %v3609_v61 = vld [vmem:[%s3723_s24 + $0x121] sm:$0xff] }
 0x106   : > { %3419 = vrot.lane.b32.xlu1 %v3418_v38, %s3670_s7  ;;  %3414 = vrot.lane.b32.xlu0 %v3413_v4, %s3671_s8  ;;  %v2797_v38 = vld [vmem:[%s3723_s24 + $0x90] sm:$0xff] }
 0x107   : > { %v3260_v54 = vpop.permute.xlu2 %3259  ;;  %2919 = vmatmul.msk.bf16.gmra.mxu3 %vm1551_vm0, %v2205_v19 }
 0x108   : > { %v3262_v58 = vunpack.i.h.bf16 %v3260_v54  ;;  %v3261_v3 = vunpack.i.l.bf16 %v3260_v54  ;;  %v3210_v44 = vpop.permute.xlu1 %3209  ;;  %v4492_v15 = vpop.permute.xlu0 %3204 }
 0x109   : > { %v3212_v31 = vunpack.i.h.bf16 %v3210_v44  ;;  %v3211_v43 = vunpack.i.l.bf16 %v3210_v44  ;;  %v3608_v44 = vld [vmem:[%s3723_s24 + $0x99] sm:$0xff] }
 0x10a   : > { %v4498_v52 = vsel %vm1650_vm4, %v1640_v59, %v3261_v3  ;;  %v4501_v25 = vsel %vm1650_vm4, %v1641_v5, %v3262_v58  ;;  %v2829_v59 = vld [vmem:[%s3723_s24 + $0x91] sm:$0xff]  ;;  %v5520_v5 = vld [vmem:[#allocation29_spill] sm:$0xff] }
 0x10b   : > { %v4506_v20 = vsel %vm1650_vm4, %v4364_v28, %v3211_v43  ;;  %v4510_v21 = vsel %vm1650_vm4, %v4368_v32, %v3212_v31  ;;  %v2798_v28 = vld [vmem:[%s3723_s24 + $0x98] sm:$0xff]  ;;  %v3448_v4 = vpack.i.bf16 %v2830_v57, %v2829_v59  ;;  %v2844_v43 = vld [vmem:[%s3723_s24 + $0x141] sm:$0xff]  ;;  %v3610_v59 = vld [vmem:[%s3723_s24 + $0x129] sm:$0xff] }
 0x10c   : > { %v3443_v58 = vpack.i.bf16 %v2798_v28, %v2797_v38  ;;  %v3607_v3 = vld [vmem:[%s3723_s24 + $0x91] sm:$0xff]  ;;  %v2843_v31 = vld [vmem:[%s3723_s24 + $0x139] sm:$0xff]  ;;  %v2206_v57 = vpack.c.bf16 %v3610_v59, %v3609_v61  ;;  %v3611_v59 = vld [vmem:[%s3723_s24 + $0xa9] sm:$0xff] }
 0x10d   : > { %3439 = vrot.lane.b32.xlu2 %v3438_v8, %s3670_s7  ;;  %v2200_v46 = vpack.c.bf16 %v3608_v44, %v3607_v3  ;;  %v2781_v8 = vld [vmem:[%s3723_s24 + $0x13a] sm:$0xff] }
 0x10e   : > { %3434 = vrot.lane.b32.xlu1 %v3433_v56, %s3671_s8  ;;  %3429 = vrot.lane.b32.xlu0 %v5520_v5, %s3672_s9 }
 0x10f   : > { %v3275_v0 = vpop.permute.xlu2 %3274 }
 0x110   : > { %v3277_v60 = vunpack.i.h.bf16 %v3275_v0  ;;  %v3276_v17 = vunpack.i.l.bf16 %v3275_v0  ;;  %v3225_v32 = vpop.permute.xlu1 %3224  ;;  %v3220_v62 = vpop.permute.xlu0 %3219  ;;  %2914 = vmatmul.msk.bf16.gmra.mxu1 %vm1551_vm0, %v2200_v46 }
 0x111   : > { %v3227_v39 = vunpack.i.h.bf16 %v3225_v32  ;;  %v3226_v48 = vunpack.i.l.bf16 %v3225_v32  ;;  %v3222_v24 = vunpack.i.h.bf16 %v3220_v62  ;;  %v3221_v54 = vunpack.i.l.bf16 %v3220_v62 }
 0x112   : > { %v4523_v51 = vsel %vm1650_vm4, %v1646_v41, %v3276_v17  ;;  %v4526_v18 = vsel %vm1650_vm4, %v1647_v7, %v3277_v60  ;;  %v3458_v17 = vpack.i.bf16 %v2781_v8, %v4488_v53  ;;  %v2832_v53 = vld [vmem:[%s3723_s24 + $0xb1] sm:$0xff] }
 0x113   : > { %5521 = vst [vmem:[#allocation23_spill] sm:$0xff] %v4526_v18  ;;  %v1659_v10 = vsel %vm1650_vm4, %v4389_v26, %v3226_v48  ;;  %v1660_v19 = vsel %vm1650_vm4, %v4393_v63, %v3227_v39  ;;  %v4536_v41 = vsel %vm1650_vm4, %v4267_v49, %v3221_v54  ;;  %v4540_v7 = vsel %vm1650_vm4, %v4270_v29, %v3222_v24  ;;  %v2811_v63 = vld [vmem:[%s3723_s24 + $0x138] sm:$0xff]  ;;  %v2812_v49 = vld [vmem:[%s3723_s24 + $0x140] sm:$0xff]  ;;  %v2831_v39 = vld [vmem:[%s3723_s24 + $0xa9] sm:$0xff] }
 0x114   : > { %v3468_v29 = vpack.i.bf16 %v2844_v43, %v2843_v31  ;;  %v3463_v60 = vpack.i.bf16 %v2812_v49, %v2811_v63  ;;  %v2799_v48 = vld [vmem:[%s3723_s24 + $0xa8] sm:$0xff]  ;;  %v2800_v24 = vld [vmem:[%s3723_s24 + $0xb0] sm:$0xff] }
 0x115   : > { %3454 = vrot.lane.b32.xlu2 %v3453_v6, %s3670_s7  ;;  %v3478_v54 = vpack.i.bf16 %v2800_v24, %v2799_v48 }
 0x116   : > { %3449 = vrot.lane.b32.xlu1 %v3448_v4, %s3671_s8  ;;  %3444 = vrot.lane.b32.xlu0 %v3443_v58, %s3672_s9 }
 0x117   : > { %v4548_v26 = vpop.permute.xlu2 %3289  ;;  %2920 = vmatmul.msk.bf16.gmra.mxu3 %vm1551_vm0, %v2206_v57  ;;  %v3612_v57 = vld [vmem:[%s3723_s24 + $0xb1] sm:$0xff] }
 0x118   : > { %v3240_v56 = vpop.permute.xlu1 %3239  ;;  %v3235_v9 = vpop.permute.xlu0 %3234 }
 0x119   : > { %v3242_v5 = vunpack.i.h.bf16 %v3240_v56  ;;  %v3241_v0 = vunpack.i.l.bf16 %v3240_v56  ;;  %v3237_v38 = vunpack.i.h.bf16 %v3235_v9  ;;  %v3236_v28 = vunpack.i.l.bf16 %v3235_v9 }
 0x11b   : > { %v4559_v32 = vsel %vm1650_vm4, %v4418_v2, %v3241_v0  ;;  %v4563_v62 = vsel %vm1650_vm4, %v4422_v27, %v3242_v5  ;;  %v4567_v6 = vsel %vm1650_vm4, %v4294_v1, %v3236_v28  ;;  %v4571_v4 = vsel %vm1650_vm4, %v4297_v47, %v3237_v38  ;;  %v4579_v2 = vld [vmem:[%s3723_s24 + $0x142] sm:$0xff]  ;;  %v1835_v47 = vld [vmem:[%s5440_s1 + $0x10] sm:$0x3] }
 0x11c   : > { %v3483_v1 = vpack.i.bf16 %v2832_v53, %v2831_v39  ;;  %v3473_v31 = vpack.i.bf16 %v4579_v2, %v2781_v8  ;;  %v1845_v43 = vunpack.c.l.b16 %v1835_v47  ;;  %v2201_v5 = vpack.c.bf16 %v3612_v57, %v3611_v59  ;;  %v2933_v39 = vld [vmem:[%s5440_s1 + $0x8] sm:$0xff]  ;;  %v2845_v59 = vld [vmem:[%s3723_s24 + $0x151] sm:$0xff]  ;;  %v2846_v57 = vld [vmem:[%s3723_s24 + $0x159] sm:$0xff] }
 0x11d   : > { %3469 = vrot.lane.b32.xlu2 %v3468_v29, %s3671_s8  ;;  %v3614_v47 = vld [vmem:[%s3723_s24 + $0x141] sm:$0xff] }
 0x11e   : > { %3464 = vrot.lane.b32.xlu1 %v3463_v60, %s3672_s9  ;;  %3459 = vrot.lane.b32.xlu0 %v3458_v17, %s3669_s29  ;;  %v1848_v0 = vpack.c.b16 %v1845_v43, %v1845_v43  ;;  %v2814_v60 = vld [vmem:[%s3723_s24 + $0x158] sm:$0xff] }
 0x11f   : > { %v3305_v27 = vpop.permute.xlu2 %3304  ;;  %v2864_v17 = vld [vmem:[%s3723_s24 + $0xb2] sm:$0xff] }
 0x120   : > { %v3307_v58 = vunpack.i.h.bf16 %v3305_v27  ;;  %v3306_v3 = vunpack.i.l.bf16 %v3305_v27  ;;  %v3255_v44 = vpop.permute.xlu1 %3254  ;;  %v3250_v46 = vpop.permute.xlu0 %3249  ;;  %2915 = vmatmul.msk.bf16.gmra.mxu1 %vm1551_vm0, %v2201_v5  ;;  %v1902_v28 = vsel %vm1900_vm3, %v1848_v0, 0 }
 0x121   : > { %v3257_v63 = vunpack.i.h.bf16 %v3255_v44  ;;  %v3256_v49 = vunpack.i.l.bf16 %v3255_v44  ;;  %v3252_v56 = vunpack.i.h.bf16 %v3250_v46  ;;  %v3251_v9 = vunpack.i.l.bf16 %v3250_v46  ;;  %1909 = vmatpush.bf16.msra.mxu0 %v1902_v28  ;;  %2934 = vmatpush.bf16.msra.mxu2 %v1902_v28 }
 0x122   : > { %v4588_v29 = vsel %vm1683_vm5, %v1659_v10, %v3306_v3  ;;  %v4591_v61 = vsel %vm1683_vm5, %v1660_v19, %v3307_v58 }
 0x123   : > { %v4597_v8 = vsel %vm1650_vm4, %v4448_v22, %v3256_v49  ;;  %v4601_v38 = vsel %vm1650_vm4, %v4452_v23, %v3257_v63  ;;  %v4605_v10 = vsel %vm1650_vm4, %v4325_v30, %v3251_v9  ;;  %v4609_v19 = vsel %vm1650_vm4, %v4328_v50, %v3252_v56  ;;  %v2813_v22 = vld [vmem:[%s3723_s24 + $0x150] sm:$0xff]  ;;  %v2932_v9 = vld [vmem:[%s5440_s1] sm:$0xff] }
 0x124   : > { %v2783_v30 = vld [vmem:[%s3723_s24 + $0x152] sm:$0xff]  ;;  %v2863_v50 = vld [vmem:[%s3723_s24 + $0xaa] sm:$0xff]  ;;  %v3498_v27 = vpack.i.bf16 %v2814_v60, %v2813_v22 }
 0x125   : > { %3484 = vrot.lane.b32.xlu2 %v3483_v1, %s3671_s8  ;;  %v3613_v1 = vld [vmem:[%s3723_s24 + $0x139] sm:$0xff]  ;;  %1910 = vmatpush.bf16.msra.mxu0 %v2933_v39  ;;  %v3493_v43 = vpack.i.bf16 %v2783_v30, %v4579_v2  ;;  %v3488_v63 = vpack.i.bf16 %v2864_v17, %v2863_v50  ;;  %v3503_v17 = vpack.i.bf16 %v2846_v57, %v2845_v59  ;;  %v2815_v59 = vld [vmem:[%s3723_s24 + $0x168] sm:$0xff] }
 0x126   : > { %3479 = vrot.lane.b32.xlu1 %v3478_v54, %s3672_s9  ;;  %3474 = vrot.lane.b32.xlu0 %v3473_v31, %s3670_s7  ;;  %v2207_v54 = vpack.c.bf16 %v3614_v47, %v3613_v1  ;;  %v2865_v47 = vld [vmem:[%s3723_s24 + $0xc2] sm:$0xff] }
 0x127   : > { %v4619_v23 = vpop.permute.xlu2 %3319  ;;  %2935 = vmatpush.bf16.msra.mxu2 %v2933_v39  ;;  %v3615_v39 = vld [vmem:[%s3723_s24 + $0xc1] sm:$0xff] }
 0x128   : > { %v3321_v53 = vunpack.i.l.bf16 %v4619_v23  ;;  %v3270_v48 = vpop.permute.xlu1 %3269  ;;  %v3265_v24 = vpop.permute.xlu0 %3264  ;;  %2921 = vmatmul.msk.bf16.gmra.mxu3 %vm1551_vm0, %v2207_v54  ;;  %v2834_v54 = vld [vmem:[%s3723_s24 + $0xc9] sm:$0xff] }
 0x129   : > { %v3272_v58 = vunpack.i.h.bf16 %v3270_v48  ;;  %v3271_v3 = vunpack.i.l.bf16 %v3270_v48  ;;  %v3267_v44 = vunpack.i.h.bf16 %v3265_v24  ;;  %v3266_v46 = vunpack.i.l.bf16 %v3265_v24  ;;  %1911 = vmatpush.bf16.msra.mxu0 %v2932_v9 }
 0x12a   : > { %v4631_v31 = vsel %vm1683_vm5, %v4559_v32, %v3321_v53  ;;  %v3616_v53 = vld [vmem:[%s3723_s24 + $0xc9] sm:$0xff] }
 0x12b   : > { %v4637_v49 = vsel %vm1650_vm4, %v4477_v34, %v3271_v3  ;;  %v4641_v56 = vsel %vm1650_vm4, %v4481_v35, %v3272_v58  ;;  %v4645_v32 = vsel %vm1650_vm4, %v4349_v45, %v3266_v46  ;;  %v4649_v2 = vsel %vm1650_vm4, %v4352_v16, %v3267_v44  ;;  %v2801_v45 = vld [vmem:[%s3723_s24 + $0xc0] sm:$0xff]  ;;  %v2802_v34 = vld [vmem:[%s3723_s24 + $0xc8] sm:$0xff]  ;;  %2936 = vmatpush.bf16.msra.mxu2 %v2932_v9  ;;  %v3617_v3 = vld [vmem:[%s3723_s24 + $0x151] sm:$0xff] }
 0x12c   : > { %v2878_v16 = vld [vmem:[%s3723_s24 + $0x15a] sm:$0xff]  ;;  %v3513_v60 = vpack.i.bf16 %v2802_v34, %v2801_v45  ;;  %v2202_v48 = vpack.c.bf16 %v3616_v53, %v3615_v39  ;;  %v2847_v45 = vld [vmem:[%s3723_s24 + $0x169] sm:$0xff]  ;;  %v2848_v34 = vld [vmem:[%s3723_s24 + $0x171] sm:$0xff] }
 0x12d   : > { %3499 = vrot.lane.b32.xlu2 %v3498_v27, %s3672_s9  ;;  %v3508_v50 = vpack.i.bf16 %v2878_v16, %v2783_v30  ;;  %v2772_v30 = vld [vmem:[%s3723_s24 + $0xca] sm:$0xff]  ;;  %v3618_v44 = vld [vmem:[%s3723_s24 + $0x159] sm:$0xff] }
 0x12e   : > { %3494 = vrot.lane.b32.xlu1 %v3493_v43, %s3669_s29  ;;  %3489 = vrot.lane.b32.xlu0 %v3488_v63, %s3670_s7  ;;  %v2208_v46 = vpack.c.bf16 %v3618_v44, %v3617_v3  ;;  %v3528_v43 = vpack.i.bf16 %v2772_v30, %v2878_v16  ;;  %v3523_v63 = vpack.i.bf16 %v2772_v30, %v2865_v47  ;;  %v2786_v16 = vld [vmem:[%s3723_s24 + $0x172] sm:$0xff] }
 0x12f   : > { %v4659_v35 = vpop.permute.xlu2 %3334  ;;  %v3619_v44 = vld [vmem:[%s3723_s24 + $0xd9] sm:$0xff] }
 0x130   : > { %v4664_v5 = vpop.permute.xlu1 %3284  ;;  %v3280_v0 = vpop.permute.xlu0 %3279  ;;  %2916 = vmatmul.msk.bf16.gmra.mxu1 %vm1551_vm0, %v2202_v48 }
 0x131   : > { %v3282_v28 = vunpack.i.h.bf16 %v3280_v0  ;;  %v3281_v22 = vunpack.i.l.bf16 %v3280_v0  ;;  %v2816_v0 = vld [vmem:[%s3723_s24 + $0x170] sm:$0xff] }
 0x133   : > { %v4670_v24 = vsel %vm1650_vm4, %v4378_v55, %v3281_v22  ;;  %v4674_v27 = vsel %vm1650_vm4, %v4381_v37, %v3282_v28  ;;  %v2833_v55 = vld [vmem:[%s3723_s24 + $0xc1] sm:$0xff]  ;;  %v2785_v28 = vld [vmem:[%s3723_s24 + $0x16a] sm:$0xff]  ;;  %v3207_v22 = vunpack.i.h.bf16 %v4492_v15 }
 0x134   : > { %5522 = vst [vmem:[#allocation27_spill] sm:$0xff] %v4670_v24  ;;  %v3518_v9 = vpack.i.bf16 %v2834_v54, %v2833_v55  ;;  %v3538_v55 = vpack.i.bf16 %v2848_v34, %v2847_v45  ;;  %v3533_v54 = vpack.i.bf16 %v2816_v0, %v2815_v59  ;;  %v4714_v3 = vpack.i.bf16 %v2786_v16, %v2785_v28  ;;  %v2835_v34 = vld [vmem:[%s3723_s24 + $0xd9] sm:$0xff]  ;;  %v2836_v59 = vld [vmem:[%s3723_s24 + $0xe1] sm:$0xff] }
 0x135   : > { %5523 = vst [vmem:[#allocation28_spill] sm:$0xff] %v4674_v27  ;;  %3514 = vrot.lane.b32.xlu2 %v3513_v60, %s3672_s9  ;;  %v3206_v60 = vunpack.i.l.bf16 %v4492_v15  ;;  %v2868_v0 = vld [vmem:[%s3723_s24 + $0xe2] sm:$0xff]  ;;  %v3286_v28 = vunpack.i.l.bf16 %v4664_v5  ;;  %v3337_v16 = vunpack.i.h.bf16 %v4659_v35 }
 0x136   : > { %3509 = vrot.lane.b32.xlu1 %v3508_v50, %s3670_s7  ;;  %3504 = vrot.lane.b32.xlu0 %v3503_v17, %s3671_s8 }
 0x137   : > { %v4681_v1 = vpop.permute.xlu2 %3349 }
 0x138   : > { %v4686_v37 = vpop.permute.xlu1 %3299  ;;  %v4688_v58 = vpop.permute.xlu0 %3294  ;;  %2922 = vmatmul.msk.bf16.gmra.mxu3 %vm1551_vm0, %v2208_v46  ;;  %v3620_v46 = vld [vmem:[%s3723_s24 + $0xe1] sm:$0xff] }
 0x139   : > { %v2203_v15 = vpack.c.bf16 %v3620_v46, %v3619_v44 }
 0x13d   : > { %3529 = vrot.lane.b32.xlu2 %v3528_v43, %s3669_s29  ;;  %v2272_v47 = vpop.f32.mrf.mxu1 }
 0x13e   : > { %3524 = vrot.lane.b32.xlu1 %v3523_v63, %s3670_s7  ;;  %3519 = vrot.lane.b32.xlu0 %v3518_v9, %s3671_s8  ;;  %2352 = vst.msk [vmem:[%s4710_s22] sm:$0xff] %vm1584_vm1, %v2272_v47 }
 0x13f   : > { %v4700_v57 = vpop.permute.xlu2 %3364 }
 0x140   : > { %v3315_v50 = vpop.permute.xlu1 %3314  ;;  %v3310_v17 = vpop.permute.xlu0 %3309  ;;  %2917 = vmatmul.msk.bf16.gmra.mxu1 %vm1551_vm0, %v2203_v15 }
 0x141   : > { %v3317_v39 = vunpack.i.h.bf16 %v3315_v50  ;;  %v3316_v53 = vunpack.i.l.bf16 %v3315_v50  ;;  %v3312_v48 = vunpack.i.h.bf16 %v3310_v17  ;;  %v3311_v30 = vunpack.i.l.bf16 %v3310_v17  ;;  %v2804_v50 = vld [vmem:[%s3723_s24 + $0xe0] sm:$0xff] }
 0x142   : > { %v3336_v17 = vunpack.i.l.bf16 %v4659_v35 }
 0x143   : > { %v4722_v43 = vsel %vm1683_vm5, %v4567_v6, %v3316_v53  ;;  %v4726_v63 = vsel %vm1683_vm5, %v4571_v4, %v3317_v39  ;;  %v4730_v9 = vsel %vm1683_vm5, %v4436_v13, %v3311_v30  ;;  %v4734_v45 = vsel %vm1683_vm5, %v4439_v14, %v3312_v48  ;;  %v2867_v13 = vld [vmem:[%s3723_s24 + $0xda] sm:$0xff]  ;;  %v3621_v30 = vld [vmem:[%s3723_s24 + $0x169] sm:$0xff] }
 0x144   : > { %v1651_v6 = vsel %vm1650_vm4, %v4234_v36, %v3206_v60  ;;  %v1652_v4 = vsel %vm1650_vm4, %v4237_v40, %v3207_v22  ;;  %v3287_v14 = vunpack.i.h.bf16 %v4664_v5  ;;  %v2453_v36 = vmul.f32 %v2272_v47, %v2272_v47  ;;  %v2803_v60 = vld [vmem:[%s3723_s24 + $0xd8] sm:$0xff] }
 0x145   : > { %3544 = vrot.lane.b32.xlu2 %v4714_v3, %s3670_s7  ;;  %v3553_v22 = vpack.i.bf16 %v2836_v59, %v2835_v34  ;;  %v2384_v53 = vsel %vm1584_vm1, %v2272_v47, 0.0  ;;  %v3558_v48 = vpack.i.bf16 %v2868_v0, %v2867_v13  ;;  %v2274_v34 = vpop.f32.mrf.mxu1  ;;  %v1684_v59 = vsel %vm1683_vm5, %v1651_v6, %v3286_v28 }
 0x146   : > { %3539 = vrot.lane.b32.xlu1 %v3538_v55, %s3671_s8  ;;  %3534 = vrot.lane.b32.xlu0 %v3533_v54, %s3672_s9  ;;  %v3622_v55 = vld [vmem:[%s3723_s24 + $0x171] sm:$0xff]  ;;  %v1685_v24 = vsel %vm1683_vm5, %v1652_v4, %v3287_v14  ;;  %v3548_v18 = vpack.i.bf16 %v2804_v50, %v2803_v60  ;;  %v2485_v35 = vsel %vm1584_vm1, %v2453_v36, 0.0  ;;  %2353 = vst.msk [vmem:[%s4710_s22 + $0x8] sm:$0xff] %vm1584_vm1, %v2274_v34  ;;  %v2385_v0 = vsel %vm1584_vm1, %v2274_v34, 0.0 }
 0x147   : > { %v4752_v40 = vpop.permute.xlu2 %3379  ;;  %v2209_v54 = vpack.c.bf16 %v3622_v55, %v3621_v30  ;;  %v2386_v14 = vadd.f32 %v2385_v0, %v2384_v53  ;;  %v2850_v60 = vld [vmem:[%s3723_s24 + $0x189] sm:$0xff]  ;;  %v3292_v50 = vunpack.i.h.bf16 %v4548_v26 }
 0x148   : > { %v3330_v5 = vpop.permute.xlu1 %3329  ;;  %v3325_v39 = vpop.permute.xlu0 %3324  ;;  %v2818_v55 = vld [vmem:[%s3723_s24 + $0x188] sm:$0xff] }
 0x149   : > { %v3332_v44 = vunpack.i.h.bf16 %v3330_v5  ;;  %v3331_v46 = vunpack.i.l.bf16 %v3330_v5  ;;  %v3327_v15 = vunpack.i.h.bf16 %v3325_v39  ;;  %v3326_v27 = vunpack.i.l.bf16 %v3325_v39  ;;  %2923 = vmatmul.msk.bf16.gmra.mxu3 %vm1551_vm0, %v2209_v54 }
 0x14a   : > { %v2454_v5 = vmul.f32 %v2274_v34, %v2274_v34  ;;  %v3291_v39 = vunpack.i.l.bf16 %v4548_v26  ;;  %v3351_v54 = vunpack.i.l.bf16 %v4681_v1 }
 0x14b   : > { %v1717_v47 = vsel %vm1716_vm6, %v1684_v59, %v3326_v27  ;;  %v1718_v13 = vsel %vm1716_vm6, %v1685_v24, %v3327_v15  ;;  %v2849_v24 = vld [vmem:[%s3723_s24 + $0x181] sm:$0xff] }
 0x14c   : > { %v1750_v6 = vsel %vm1749_vm7, %v1717_v47, %v3331_v46  ;;  %v1751_v4 = vsel %vm1749_vm7, %v1718_v13, %v3332_v44  ;;  %v2486_v27 = vsel %vm1584_vm1, %v2454_v5, 0.0  ;;  %v3573_v26 = vpack.i.bf16 %v2850_v60, %v2849_v24 }
 0x14d   : > { %v1783_v28 = vsel %vm1782_vm8, %v1750_v6, %v3336_v17  ;;  %v1784_v36 = vsel %vm1782_vm8, %v1751_v4, %v3337_v16  ;;  %3559 = vrot.lane.b32.xlu2 %v3558_v48, %s3670_s7  ;;  %v2487_v30 = vadd.f32 %v2486_v27, %v2485_v35  ;;  %v2817_v16 = vld [vmem:[%s3723_s24 + $0x180] sm:$0xff]  ;;  %v3352_v48 = vunpack.i.h.bf16 %v4681_v1  ;;  %v2277_v59 = vpop.f32.mrf.mxu1 }
 0x14e   : > { %3554 = vrot.lane.b32.xlu1 %v3553_v22, %s3671_s8  ;;  %3549 = vrot.lane.b32.xlu0 %v3548_v18, %s3672_s9  ;;  %v1815_v53 = vpack.c.bf16 %v1784_v36, %v1783_v28  ;;  %v1686_v35 = vsel %vm1683_vm5, %v4506_v20, %v3291_v39  ;;  %v1687_v47 = vsel %vm1683_vm5, %v4510_v21, %v3292_v50  ;;  %v2387_v5 = vsel %vm1584_vm1, %v2277_v59, 0.0  ;;  %v2819_v50 = vld [vmem:[%s3723_s24 + $0x198] sm:$0xff]  ;;  %v2820_v39 = vld [vmem:[%s3723_s24 + $0x1a0] sm:$0xff] }
 0x14f   : > { %v4781_v17 = vpop.permute.xlu2 %3394  ;;  %v3568_v13 = vpack.i.bf16 %v2818_v55, %v2817_v16  ;;  %2354 = vst.msk [vmem:[%s4710_s22 + $0x10] sm:$0xff] %vm1584_vm1, %v2277_v59  ;;  %v2455_v6 = vmul.f32 %v2277_v59, %v2277_v59  ;;  %v2388_v21 = vadd.f32 %v2387_v5, %v2386_v14  ;;  %v2787_v14 = vld [vmem:[%s3723_s24 + $0x182] sm:$0xff]  ;;  %v2851_v5 = vld [vmem:[%s3723_s24 + $0x199] sm:$0xff] }
 0x150   : > { %v3345_v44 = vpop.permute.xlu1 %3344  ;;  %v3340_v46 = vpop.permute.xlu0 %3339  ;;  %2893 = vmatmul.msk.bf16.vlgmr.msra.gmra.mxu0 %vm1851_vm9, %v1815_v53  ;;  %v2788_v53 = vld [vmem:[%s3723_s24 + $0x18a] sm:$0xff] }
 0x151   : > { %v3347_v15 = vunpack.i.h.bf16 %v3345_v44  ;;  %v3346_v22 = vunpack.i.l.bf16 %v3345_v44  ;;  %v3342_v34 = vunpack.i.h.bf16 %v3340_v46  ;;  %v3341_v18 = vunpack.i.l.bf16 %v3340_v46 }
 0x152   : > { %v2488_v27 = vsel %vm1584_vm1, %v2455_v6, 0.0 }
 0x153   : > { %v1719_v1 = vsel %vm1716_vm6, %v1686_v35, %v3341_v18  ;;  %v1720_v0 = vsel %vm1716_vm6, %v1687_v47, %v3342_v34  ;;  %v2489_v60 = vadd.f32 %v2488_v27, %v2487_v30  ;;  %v3583_v30 = vpack.i.bf16 %v2788_v53, %v2787_v14 }
 0x154   : > { %v1752_v4 = vsel %vm1749_vm7, %v1719_v1, %v3346_v22  ;;  %v1753_v20 = vsel %vm1749_vm7, %v1720_v0, %v3347_v15  ;;  %v3588_v15 = vpack.i.bf16 %v2820_v39, %v2819_v50  ;;  %v3367_v1 = vunpack.i.h.bf16 %v4700_v57 }
 0x155   : > { %v1785_v28 = vsel %vm1782_vm8, %v1752_v4, %v3351_v54  ;;  %v1786_v36 = vsel %vm1782_vm8, %v1753_v20, %v3352_v48  ;;  %3574 = vrot.lane.b32.xlu2 %v3573_v26, %s3671_s8  ;;  %v3623_v48 = vld [vmem:[%s3723_s24 + $0x181] sm:$0xff]  ;;  %v3624_v54 = vld [vmem:[%s3723_s24 + $0x189] sm:$0xff]  ;;  %v2279_v22 = vpop.f32.mrf.mxu1  ;;  %v3366_v0 = vunpack.i.l.bf16 %v4700_v57  ;;  %v3297_v27 = vunpack.i.h.bf16 %v4688_v58 }
 0x156   : > { %3569 = vrot.lane.b32.xlu1 %v3568_v13, %s3672_s9  ;;  %3564 = vrot.lane.b32.xlu0 %v4714_v3, %s3669_s29  ;;  %v1816_v24 = vpack.c.bf16 %v1786_v36, %v1785_v28  ;;  %v2210_v44 = vpack.c.bf16 %v3624_v54, %v3623_v48  ;;  %v3322_v3 = vunpack.i.h.bf16 %v4619_v23  ;;  %2355 = vst.msk [vmem:[%s4710_s22 + $0x18] sm:$0xff] %vm1584_vm1, %v2279_v22  ;;  %v2389_v59 = vsel %vm1584_vm1, %v2279_v22, 0.0  ;;  %v2852_v4 = vld [vmem:[%s3723_s24 + $0x1a1] sm:$0xff] }
 0x157   : > { %v4814_v46 = vpop.permute.xlu2 %3409  ;;  %v2390_v47 = vadd.f32 %v2389_v59, %v2388_v21  ;;  %v2456_v23 = vmul.f32 %v2279_v22, %v2279_v22  ;;  %v2883_v20 = vld [vmem:[%s3723_s24 + $0x19a] sm:$0xff]  ;;  %v2884_v21 = vld [vmem:[%s3723_s24 + $0x1a2] sm:$0xff]  ;;  %v3296_v50 = vunpack.i.l.bf16 %v4688_v58  ;;  %v1689_v59 = vsel %vm1683_vm5, %v4408_v42, %v3297_v27 }
 0x158   : > { %v3360_v16 = vpop.permute.xlu1 %3359  ;;  %v4810_v55 = vpop.permute.xlu0 %3354  ;;  %v1700_v13 = vsel %vm1683_vm5, %v4464_v33, %v3322_v3 }
 0x159   : > { %v3356_v26 = vunpack.i.l.bf16 %v4810_v55  ;;  %2924 = vmatmul.msk.bf16.gmra.mxu3 %vm1551_vm0, %v2210_v44  ;;  %v3362_v34 = vunpack.i.h.bf16 %v3360_v16  ;;  %v3361_v18 = vunpack.i.l.bf16 %v3360_v16  ;;  %v2490_v28 = vsel %vm1584_vm1, %v2456_v23, 0.0 }
 0x15a   : > { %v2491_v57 = vadd.f32 %v2490_v28, %v2489_v60  ;;  %v3593_v16 = vpack.i.bf16 %v2852_v4, %v2851_v5  ;;  %v3598_v44 = vpack.i.bf16 %v2884_v21, %v2883_v20  ;;  %v3381_v23 = vunpack.i.l.bf16 %v4752_v40 }
 0x15b   : > { %v1701_v35 = vsel %vm1683_vm5, %v4467_v12, %v3356_v26  ;;  %v1733_v6 = vsel %vm1716_vm6, %v1700_v13, %v3361_v18  ;;  %v1688_v18 = vsel %vm1683_vm5, %v4405_v11, %v3296_v50  ;;  %v3357_v20 = vunpack.i.h.bf16 %v4810_v55 }
 0x15c   : > { %v1734_v12 = vsel %vm1716_vm6, %v1701_v35, %v3362_v34  ;;  %v1766_v48 = vsel %vm1749_vm7, %v1733_v6, %v3366_v0  ;;  %v3382_v35 = vunpack.i.h.bf16 %v4752_v40 }
 0x15d   : > { %3589 = vrot.lane.b32.xlu2 %v3588_v15, %s3672_s9  ;;  %v2282_v53 = vpop.f32.mrf.mxu1  ;;  %v1767_v54 = vsel %vm1749_vm7, %v1734_v12, %v3367_v1 }
 0x15e   : > { %3584 = vrot.lane.b32.xlu1 %v3583_v30, %s3669_s29  ;;  %3579 = vrot.lane.b32.xlu0 %v3583_v30, %s3670_s7  ;;  %2356 = vst.msk [vmem:[%s4710_s22 + $0x20] sm:$0xff] %vm1584_vm1, %v2282_v53  ;;  %v2391_v3 = vsel %vm1584_vm1, %v2282_v53, 0.0  ;;  %v2457_v34 = vmul.f32 %v2282_v53, %v2282_v53  ;;  %v3396_v53 = vunpack.i.l.bf16 %v4781_v17 }
 0x15f   : > { %v4845_v26 = vpop.permute.xlu2 %3424  ;;  %v2392_v30 = vadd.f32 %v2391_v3, %v2390_v47 }
 0x160   : > { %v3375_v33 = vpop.permute.xlu1 %3374  ;;  %v3370_v36 = vpop.permute.xlu0 %3369  ;;  %2894 = vmatmul.msk.bf16.gmra.mxu0 %vm1851_vm9, %v1816_v24  ;;  %v2492_v11 = vsel %vm1584_vm1, %v2457_v34, 0.0 }
 0x161   : > { %v3372_v39 = vunpack.i.h.bf16 %v3370_v36  ;;  %v3371_v14 = vunpack.i.l.bf16 %v3370_v36  ;;  %v3377_v15 = vunpack.i.h.bf16 %v3375_v33  ;;  %v3376_v24 = vunpack.i.l.bf16 %v3375_v33 }
 0x162   : > { %v2493_v0 = vadd.f32 %v2492_v11, %v2491_v57 }
 0x163   : > { %v1799_v60 = vsel %vm1782_vm8, %v1766_v48, %v3371_v14  ;;  %v1800_v22 = vsel %vm1782_vm8, %v1767_v54, %v3372_v39  ;;  %v1721_v13 = vsel %vm1716_vm6, %v1688_v18, %v3376_v24  ;;  %v1722_v47 = vsel %vm1716_vm6, %v1689_v59, %v3377_v15 }
 0x164   : > { %v1823_v58 = vpack.c.bf16 %v1800_v22, %v1799_v60  ;;  %v1754_v40 = vsel %vm1749_vm7, %v1721_v13, %v3381_v23  ;;  %v1755_v4 = vsel %vm1749_vm7, %v1722_v47, %v3382_v35  ;;  %v3397_v14 = vunpack.i.h.bf16 %v4781_v17 }
 0x165   : > { %v2284_v12 = vpop.f32.mrf.mxu1 }
 0x166   : > { %3594 = vrot.lane.b32.xlu0 %v3593_v16, %s3671_s8  ;;  %2901 = vmatmul.msk.bf16.vlgmr.msra.gmra.mxu2 %vm1851_vm9, %v1823_v58  ;;  %2357 = vst.msk [vmem:[%s4710_s22 + $0x28] sm:$0xff] %vm1584_vm1, %v2284_v12  ;;  %v2393_v57 = vsel %vm1584_vm1, %v2284_v12, 0.0  ;;  %v2458_v27 = vmul.f32 %v2284_v12, %v2284_v12  ;;  %v1702_v16 = vsel %vm1683_vm5, %v4605_v10, %v3357_v20  ;;  %v3302_v10 = vunpack.i.h.bf16 %v4686_v37 }
 0x167   : > { %3599 = vrot.lane.b32.xlu1 %v3598_v44, %s3670_s7  ;;  %v4873_v50 = vpop.permute.xlu2 %3439  ;;  %v2394_v39 = vadd.f32 %v2393_v57, %v2392_v30  ;;  %v1735_v17 = vsel %vm1716_vm6, %v1702_v16, %v3396_v53 }
 0x168   : > { %v4862_v1 = vpop.permute.xlu1 %3389  ;;  %v3385_v42 = vpop.permute.xlu0 %3384  ;;  %v2494_v55 = vsel %vm1584_vm1, %v2458_v27, 0.0 }
 0x169   : > { %v3387_v5 = vunpack.i.h.bf16 %v3385_v42  ;;  %v3386_v6 = vunpack.i.l.bf16 %v3385_v42  ;;  %v3391_v21 = vunpack.i.l.bf16 %v4862_v1  ;;  %v2495_v54 = vadd.f32 %v2494_v55, %v2493_v0 }
 0x16a   : > { %v3412_v42 = vunpack.i.h.bf16 %v4814_v46  ;;  %v3411_v0 = vunpack.i.l.bf16 %v4814_v46 }
 0x16b   : > { %v1787_v28 = vsel %vm1782_vm8, %v1754_v40, %v3386_v6  ;;  %v1788_v33 = vsel %vm1782_vm8, %v1755_v4, %v3387_v5  ;;  %v1703_v48 = vsel %vm1683_vm5, %v4609_v19, %v3391_v21  ;;  %v3301_v19 = vunpack.i.l.bf16 %v4686_v37 }
 0x16c   : > { %v1817_v36 = vpack.c.bf16 %v1788_v33, %v1787_v28  ;;  %v1736_v30 = vsel %vm1716_vm6, %v1703_v48, %v3397_v14  ;;  %v1691_v40 = vsel %vm1683_vm5, %v4540_v7, %v3302_v10 }
 0x16d   : > { %v2287_v3 = vpop.f32.mrf.mxu1  ;;  %v1690_v12 = vsel %vm1683_vm5, %v4536_v41, %v3301_v19  ;;  %v1724_v27 = vsel %vm1716_vm6, %v1691_v40, %v3412_v42 }
 0x16e   : > { %2358 = vst.msk [vmem:[%s4710_s22 + $0x30] sm:$0xff] %vm1584_vm1, %v2287_v3  ;;  %v2395_v23 = vsel %vm1584_vm1, %v2287_v3, 0.0  ;;  %v2459_v13 = vmul.f32 %v2287_v3, %v2287_v3  ;;  %v1723_v57 = vsel %vm1716_vm6, %v1690_v12, %v3411_v0 }
 0x16f   : > { %v2396_v11 = vadd.f32 %v2395_v23, %v2394_v39  ;;  %v4897_v5 = vpop.permute.xlu2 %3454 }
 0x170   : > { %v3405_v44 = vpop.permute.xlu1 %3404  ;;  %v3400_v15 = vpop.permute.xlu0 %3399  ;;  %2895 = vmatmul.msk.bf16.gmra.mxu0 %vm1851_vm9, %v1817_v36  ;;  %v2496_v37 = vsel %vm1584_vm1, %v2459_v13, 0.0 }
 0x171   : > { %v3407_v24 = vunpack.i.h.bf16 %v3405_v44  ;;  %v3406_v60 = vunpack.i.l.bf16 %v3405_v44  ;;  %v3402_v22 = vunpack.i.h.bf16 %v3400_v15  ;;  %v3401_v58 = vunpack.i.l.bf16 %v3400_v15 }
 0x172   : > { %v2497_v6 = vadd.f32 %v2496_v37, %v2495_v54  ;;  %v3426_v15 = vunpack.i.l.bf16 %v4845_v26 }
 0x173   : > { %v1768_v34 = vsel %vm1749_vm7, %v1735_v17, %v3401_v58  ;;  %v1769_v18 = vsel %vm1749_vm7, %v1736_v30, %v3402_v22  ;;  %v3442_v22 = vunpack.i.h.bf16 %v4873_v50  ;;  %v3441_v58 = vunpack.i.l.bf16 %v4873_v50 }
 0x174   : > { %v1801_v59 = vsel %vm1782_vm8, %v1768_v34, %v3406_v60  ;;  %v1802_v35 = vsel %vm1782_vm8, %v1769_v18, %v3407_v24  ;;  %v3392_v24 = vunpack.i.h.bf16 %v4862_v1 }
 0x175   : > { %v1824_v47 = vpack.c.bf16 %v1802_v35, %v1801_v59  ;;  %v2289_v36 = vpop.f32.mrf.mxu1  ;;  %v1705_v59 = vsel %vm1683_vm5, %v4601_v38, %v3426_v15 }
 0x176   : > { %2359 = vst.msk [vmem:[%s4710_s22 + $0x38] sm:$0xff] %vm1584_vm1, %v2289_v36  ;;  %v2397_v7 = vsel %vm1584_vm1, %v2289_v36, 0.0  ;;  %v2460_v14 = vmul.f32 %v2289_v36, %v2289_v36  ;;  %v1704_v35 = vsel %vm1683_vm5, %v4597_v8, %v3392_v24 }
 0x177   : > { %2902 = vmatmul.msk.bf16.gmra.mxu2 %vm1851_vm9, %v1824_v47  ;;  %v2398_v16 = vadd.f32 %v2397_v7, %v2396_v11  ;;  %v4924_v30 = vpop.permute.xlu2 %3469 }
 0x178   : > { %v3420_v4 = vpop.permute.xlu1 %3419  ;;  %v3415_v20 = vpop.permute.xlu0 %3414  ;;  %v2498_v54 = vsel %vm1584_vm1, %v2460_v14, 0.0 }
 0x179   : > { %v3422_v21 = vunpack.i.h.bf16 %v3420_v4  ;;  %v3421_v28 = vunpack.i.l.bf16 %v3420_v4  ;;  %v3417_v33 = vunpack.i.h.bf16 %v3415_v20  ;;  %v3416_v46 = vunpack.i.l.bf16 %v3415_v20 }
 0x17a   : > { %v4914_v44 = vpop.f32.mrf.mxu3  ;;  %v2499_v60 = vadd.f32 %v2498_v54, %v2497_v6  ;;  %v3457_v4 = vunpack.i.h.bf16 %v4897_v5  ;;  %v3456_v20 = vunpack.i.l.bf16 %v4897_v5 }
 0x17b   : > { %v1756_v39 = vsel %vm1749_vm7, %v1723_v57, %v3416_v46  ;;  %v1757_v41 = vsel %vm1749_vm7, %v1724_v27, %v3417_v33  ;;  %2370 = vst.msk [vmem:[%s4710_s22 + $0x90] sm:$0xff] %vm1584_vm1, %v4914_v44 }
 0x17c   : > { %v1789_v53 = vsel %vm1782_vm8, %v1756_v39, %v3421_v28  ;;  %v1790_v55 = vsel %vm1782_vm8, %v1757_v41, %v3422_v21 }
 0x17d   : > { %v1818_v48 = vpack.c.bf16 %v1790_v55, %v1789_v53  ;;  %v2292_v1 = vpop.f32.mrf.mxu1 }
 0x17e   : > { %2360 = vst.msk [vmem:[%s4710_s22 + $0x40] sm:$0xff] %vm1584_vm1, %v2292_v1  ;;  %v2399_v13 = vsel %vm1584_vm1, %v2292_v1, 0.0  ;;  %v2461_v47 = vmul.f32 %v2292_v1, %v2292_v1 }
 0x17f   : > { %v2400_v0 = vadd.f32 %v2399_v13, %v2398_v16  ;;  %v4950_v39 = vpop.permute.xlu2 %3484  ;;  %v3471_v13 = vunpack.i.l.bf16 %v4924_v30 }
 0x180   : > { %v3435_v3 = vpop.permute.xlu1 %3434  ;;  %v3430_v17 = vpop.permute.xlu0 %3429  ;;  %2896 = vmatmul.msk.bf16.gmra.mxu0 %vm1851_vm9, %v1818_v48  ;;  %v2500_v8 = vsel %vm1584_vm1, %v2461_v47, 0.0 }
 0x181   : > { %v3437_v10 = vunpack.i.h.bf16 %v3435_v3  ;;  %v3436_v19 = vunpack.i.l.bf16 %v3435_v3  ;;  %v3432_v34 = vunpack.i.h.bf16 %v3430_v17  ;;  %v3431_v18 = vunpack.i.l.bf16 %v3430_v17 }
 0x182   : > { %v4940_v6 = vpop.f32.mrf.mxu3  ;;  %v2501_v40 = vadd.f32 %v2500_v8, %v2499_v60  ;;  %v3427_v17 = vunpack.i.h.bf16 %v4845_v26  ;;  %v3472_v26 = vunpack.i.h.bf16 %v4924_v30 }
 0x183   : > { %v1737_v50 = vsel %vm1716_vm6, %v1704_v35, %v3431_v18  ;;  %v1738_v23 = vsel %vm1716_vm6, %v1705_v59, %v3432_v34  ;;  %2371 = vst.msk [vmem:[%s4710_s22 + $0x98] sm:$0xff] %vm1584_vm1, %v4940_v6 }
 0x184   : > { %v1770_v11 = vsel %vm1749_vm7, %v1737_v50, %v3436_v19  ;;  %v1771_v42 = vsel %vm1749_vm7, %v1738_v23, %v3437_v10  ;;  %v1706_v23 = vsel %vm1683_vm5, %v4498_v52, %v3427_v17 }
 0x185   : > { %v1803_v38 = vsel %vm1782_vm8, %v1770_v11, %v3441_v58  ;;  %v1804_v37 = vsel %vm1782_vm8, %v1771_v42, %v3442_v22  ;;  %v2294_v27 = vpop.f32.mrf.mxu1 }
 0x186   : > { %v1825_v12 = vpack.c.bf16 %v1804_v37, %v1803_v38  ;;  %2361 = vst.msk [vmem:[%s4710_s22 + $0x48] sm:$0xff] %vm1584_vm1, %v2294_v27  ;;  %v2401_v7 = vsel %vm1584_vm1, %v2294_v27, 0.0  ;;  %v2462_v14 = vmul.f32 %v2294_v27, %v2294_v27  ;;  %v3487_v27 = vunpack.i.h.bf16 %v4950_v39 }
 0x187   : > { %v2402_v16 = vadd.f32 %v2401_v7, %v2400_v0  ;;  %v4977_v59 = vpop.permute.xlu2 %3499 }
 0x188   : > { %v3450_v21 = vpop.permute.xlu1 %3449  ;;  %v3445_v28 = vpop.permute.xlu0 %3444  ;;  %2903 = vmatmul.msk.bf16.gmra.mxu2 %vm1851_vm9, %v1825_v12  ;;  %v2502_v15 = vsel %vm1584_vm1, %v2462_v14, 0.0 }
 0x189   : > { %v3452_v33 = vunpack.i.h.bf16 %v3450_v21  ;;  %v3451_v46 = vunpack.i.l.bf16 %v3450_v21  ;;  %v3447_v36 = vunpack.i.h.bf16 %v3445_v28  ;;  %v3446_v57 = vunpack.i.l.bf16 %v3445_v28 }
 0x18a   : > { %v4962_v24 = vpop.f32.mrf.mxu3  ;;  %v2503_v60 = vadd.f32 %v2502_v15, %v2501_v40 }
 0x18b   : > { %v1725_v41 = vsel %vm1716_vm6, %v4588_v29, %v3446_v57  ;;  %v1726_v5 = vsel %vm1716_vm6, %v4591_v61, %v3447_v36  ;;  %2372 = vst.msk [vmem:[%s4710_s22 + $0xa0] sm:$0xff] %vm1584_vm1, %v4962_v24 }
 0x18c   : > { %v1758_v53 = vsel %vm1749_vm7, %v1725_v41, %v3451_v46  ;;  %v1759_v55 = vsel %vm1749_vm7, %v1726_v5, %v3452_v33  ;;  %v3486_v41 = vunpack.i.l.bf16 %v4950_v39 }
 0x18d   : > { %v1791_v48 = vsel %vm1782_vm8, %v1758_v53, %v3456_v20  ;;  %v1792_v54 = vsel %vm1782_vm8, %v1759_v55, %v3457_v4  ;;  %v2297_v3 = vpop.f32.mrf.mxu1 }
 0x18e   : > { %v1819_v29 = vpack.c.bf16 %v1792_v54, %v1791_v48  ;;  %2362 = vst.msk [vmem:[%s4710_s22 + $0x50] sm:$0xff] %vm1584_vm1, %v2297_v3  ;;  %v2403_v34 = vsel %vm1584_vm1, %v2297_v3, 0.0  ;;  %v2463_v35 = vmul.f32 %v2297_v3, %v2297_v3 }
 0x18f   : > { %v2404_v1 = vadd.f32 %v2403_v34, %v2402_v16  ;;  %v5006_v5 = vpop.permute.xlu2 %3514 }
 0x190   : > { %v3465_v61 = vpop.permute.xlu1 %3464  ;;  %v4967_v22 = vpop.permute.xlu0 %3459  ;;  %2897 = vmatmul.msk.bf16.gmra.mxu0 %vm1851_vm9, %v1819_v29  ;;  %v2504_v11 = vsel %vm1584_vm1, %v2463_v35, 0.0 }
 0x191   : > { %v3461_v58 = vunpack.i.l.bf16 %v4967_v22  ;;  %v3467_v10 = vunpack.i.h.bf16 %v3465_v61  ;;  %v3466_v19 = vunpack.i.l.bf16 %v3465_v61  ;;  %v2505_v38 = vadd.f32 %v2504_v11, %v2503_v60 }
 0x192   : > { %v4979_v50 = vpop.f32.mrf.mxu3 }
 0x193   : > { %v1707_v18 = vsel %vm1683_vm5, %v4501_v25, %v3461_v58  ;;  %2373 = vst.msk [vmem:[%s4710_s22 + $0xa8] sm:$0xff] %vm1584_vm1, %v4979_v50  ;;  %v1739_v47 = vsel %vm1716_vm6, %v1706_v23, %v3466_v19 }
 0x194   : > { %v1740_v25 = vsel %vm1716_vm6, %v1707_v18, %v3467_v10  ;;  %v1772_v52 = vsel %vm1749_vm7, %v1739_v47, %v3471_v13  ;;  %v3502_v18 = vunpack.i.h.bf16 %v4977_v59 }
 0x195   : > { %v2299_v12 = vpop.f32.mrf.mxu1  ;;  %v1773_v30 = vsel %vm1749_vm7, %v1740_v25, %v3472_v26 }
 0x196   : > { %2363 = vst.msk [vmem:[%s4710_s22 + $0x58] sm:$0xff] %vm1584_vm1, %v2299_v12  ;;  %v2405_v33 = vsel %vm1584_vm1, %v2299_v12, 0.0  ;;  %v2464_v36 = vmul.f32 %v2299_v12, %v2299_v12 }
 0x197   : > { %v2406_v46 = vadd.f32 %v2405_v33, %v2404_v1  ;;  %v3501_v1 = vunpack.i.l.bf16 %v4977_v59  ;;  %v5037_v25 = vpop.permute.xlu2 %3529  ;;  %v3517_v33 = vunpack.i.h.bf16 %v5006_v5 }
 0x198   : > { %v3480_v42 = vpop.permute.xlu1 %3479  ;;  %v3475_v0 = vpop.permute.xlu0 %3474  ;;  %v2506_v53 = vsel %vm1584_vm1, %v2464_v36, 0.0 }
 0x199   : > { %v3477_v37 = vunpack.i.h.bf16 %v3475_v0  ;;  %v3476_v8 = vunpack.i.l.bf16 %v3475_v0  ;;  %v3482_v40 = vunpack.i.h.bf16 %v3480_v42  ;;  %v3481_v4 = vunpack.i.l.bf16 %v3480_v42 }
 0x19a   : > { %v4998_v57 = vpop.f32.mrf.mxu3  ;;  %v2507_v48 = vadd.f32 %v2506_v53, %v2505_v38 }
 0x19b   : > { %v1805_v20 = vsel %vm1782_vm8, %v1772_v52, %v3476_v8  ;;  %v1806_v21 = vsel %vm1782_vm8, %v1773_v30, %v3477_v37  ;;  %2374 = vst.msk [vmem:[%s4710_s22 + $0xb0] sm:$0xff] %vm1584_vm1, %v4998_v57  ;;  %v1727_v7 = vsel %vm1716_vm6, %v4730_v9, %v3481_v4  ;;  %v1728_v14 = vsel %vm1716_vm6, %v4734_v45, %v3482_v40 }
 0x19c   : > { %v1826_v28 = vpack.c.bf16 %v1806_v21, %v1805_v20  ;;  %v1760_v29 = vsel %vm1749_vm7, %v1727_v7, %v3486_v41  ;;  %v1761_v60 = vsel %vm1749_vm7, %v1728_v14, %v3487_v27  ;;  %v3462_v9 = vunpack.i.h.bf16 %v4967_v22 }
 0x19d   : > { %v2302_v15 = vpop.f32.mrf.mxu1 }
 0x19e   : > { %2904 = vmatmul.msk.bf16.gmra.mxu2 %vm1851_vm9, %v1826_v28  ;;  %2364 = vst.msk [vmem:[%s4710_s22 + $0x60] sm:$0xff] %vm1584_vm1, %v2302_v15  ;;  %v2407_v17 = vsel %vm1584_vm1, %v2302_v15, 0.0  ;;  %v2465_v10 = vmul.f32 %v2302_v15, %v2302_v15  ;;  %v1708_v35 = vsel %vm1683_vm5, %v4645_v32, %v3462_v9 }
 0x19f   : > { %v2408_v19 = vadd.f32 %v2407_v17, %v2406_v46  ;;  %v1741_v37 = vsel %vm1716_vm6, %v1708_v35, %v3501_v1  ;;  %v3516_v46 = vunpack.i.l.bf16 %v5006_v5  ;;  %v1730_v5 = vsel %vm1716_vm6, %v4726_v63, %v3517_v33 }
 0x1a0   : > { %v5013_v55 = vpop.permute.xlu1 %3494  ;;  %v3490_v16 = vpop.permute.xlu0 %3489  ;;  %v2508_v22 = vsel %vm1584_vm1, %v2465_v10, 0.0  ;;  %v3531_v63 = vunpack.i.l.bf16 %v5037_v25 }
 0x1a1   : > { %v3492_v39 = vunpack.i.h.bf16 %v3490_v16  ;;  %v3491_v54 = vunpack.i.l.bf16 %v3490_v16  ;;  %v3496_v45 = vunpack.i.l.bf16 %v5013_v55  ;;  %v2509_v26 = vadd.f32 %v2508_v22, %v2507_v48  ;;  %v3545_v48 = vpop.permute.xlu2 %3544 }
 0x1a2   : > { %v5024_v34 = vpop.f32.mrf.mxu3  ;;  %v3497_v10 = vunpack.i.h.bf16 %v5013_v55  ;;  %v3547_v22 = vunpack.i.h.bf16 %v3545_v48  ;;  %v3546_v35 = vunpack.i.l.bf16 %v3545_v48 }
 0x1a3   : > { %v1793_v61 = vsel %vm1782_vm8, %v1760_v29, %v3491_v54  ;;  %v1794_v58 = vsel %vm1782_vm8, %v1761_v60, %v3492_v39  ;;  %2375 = vst.msk [vmem:[%s4710_s22 + $0xb8] sm:$0xff] %vm1584_vm1, %v5024_v34  ;;  %v1709_v23 = vsel %vm1683_vm5, %v4649_v2, %v3496_v45  ;;  %v1729_v54 = vsel %vm1716_vm6, %v4722_v43, %v3516_v46 }
 0x1a4   : > { %v1820_v3 = vpack.c.bf16 %v1794_v58, %v1793_v61  ;;  %v1742_v8 = vsel %vm1716_vm6, %v1709_v23, %v3502_v18  ;;  %v1710_v55 = vsel %vm1683_vm5, %v4637_v49, %v3497_v10  ;;  %v2419_v10 = vsel %vm1584_vm1, %v4914_v44, 0.0 }
 0x1a5   : > { %v2304_v38 = vpop.f32.mrf.mxu1 }
 0x1a6   : > { %2898 = vmatmul.msk.bf16.gmra.mxu0 %vm1851_vm9, %v1820_v3  ;;  %2365 = vst.msk [vmem:[%s4710_s22 + $0x68] sm:$0xff] %vm1584_vm1, %v2304_v38  ;;  %v2409_v12 = vsel %vm1584_vm1, %v2304_v38, 0.0  ;;  %v2466_v52 = vmul.f32 %v2304_v38, %v2304_v38 }
 0x1a7   : > { %v2410_v4 = vadd.f32 %v2409_v12, %v2408_v19 }
 0x1a8   : > { %v3510_v13 = vpop.permute.xlu1 %3509  ;;  %v3505_v47 = vpop.permute.xlu0 %3504  ;;  %v2510_v21 = vsel %vm1584_vm1, %v2466_v52, 0.0 }
 0x1a9   : > { %v3512_v59 = vunpack.i.h.bf16 %v3510_v13  ;;  %v3511_v11 = vunpack.i.l.bf16 %v3510_v13  ;;  %v3507_v42 = vunpack.i.h.bf16 %v3505_v47  ;;  %v3506_v0 = vunpack.i.l.bf16 %v3505_v47  ;;  %v3560_v38 = vpop.permute.xlu2 %3559 }
 0x1aa   : > { %v2511_v36 = vadd.f32 %v2510_v21, %v2509_v26  ;;  %v3562_v46 = vunpack.i.h.bf16 %v3560_v38 }
 0x1ab   : > { %v1774_v32 = vsel %vm1749_vm7, %v1741_v37, %v3506_v0  ;;  %v1775_v2 = vsel %vm1749_vm7, %v1742_v8, %v3507_v42  ;;  %v5049_v28 = vpop.f32.mrf.mxu3 }
 0x1ac   : > { %v1807_v30 = vsel %vm1782_vm8, %v1774_v32, %v3511_v11  ;;  %v1808_v40 = vsel %vm1782_vm8, %v1775_v2, %v3512_v59  ;;  %2376 = vst.msk [vmem:[%s4710_s22 + $0xc0] sm:$0xff] %vm1584_vm1, %v5049_v28  ;;  %v1711_v11 = vsel %vm1683_vm5, %v4641_v56, %v3531_v63 }
 0x1ad   : > { %v1827_v20 = vpack.c.bf16 %v1808_v40, %v1807_v30  ;;  %v2307_v39 = vpop.f32.mrf.mxu1  ;;  %v3532_v40 = vunpack.i.h.bf16 %v5037_v25 }
 0x1ae   : > { %2366 = vst.msk [vmem:[%s4710_s22 + $0x70] sm:$0xff] %vm1584_vm1, %v2307_v39  ;;  %v2411_v60 = vsel %vm1584_vm1, %v2307_v39, 0.0  ;;  %v2467_v9 = vmul.f32 %v2307_v39, %v2307_v39  ;;  %v2471_v39 = vmul.f32 %v4914_v44, %v4914_v44 }
 0x1af   : > { %2905 = vmatmul.msk.bf16.gmra.mxu2 %vm1851_vm9, %v1827_v20  ;;  %v2412_v58 = vadd.f32 %v2411_v60, %v2410_v4 }
 0x1b0   : > { %v3525_v27 = vpop.permute.xlu1 %3524  ;;  %v3520_v41 = vpop.permute.xlu0 %3519  ;;  %v2512_v43 = vsel %vm1584_vm1, %v2467_v9, 0.0 }
 0x1b1   : > { %v3527_v7 = vunpack.i.h.bf16 %v3525_v27  ;;  %v3526_v14 = vunpack.i.l.bf16 %v3525_v27  ;;  %v3522_v53 = vunpack.i.h.bf16 %v3520_v41  ;;  %v3521_v16 = vunpack.i.l.bf16 %v3520_v41 }
 0x1b2   : > { %v2513_v19 = vadd.f32 %v2512_v43, %v2511_v36  ;;  %v3561_v36 = vunpack.i.l.bf16 %v3560_v38 }
 0x1b3   : > { %v1762_v15 = vsel %vm1749_vm7, %v1729_v54, %v3521_v16  ;;  %v1763_v29 = vsel %vm1749_vm7, %v1730_v5, %v3522_v53  ;;  %v5069_v17 = vpop.f32.mrf.mxu3  ;;  %v1699_v16 = vsel %vm1683_vm5, %v4563_v62, %v3532_v40 }
 0x1b4   : > { %v1795_v45 = vsel %vm1782_vm8, %v1762_v15, %v3526_v14  ;;  %v1796_v61 = vsel %vm1782_vm8, %v1763_v29, %v3527_v7  ;;  %2377 = vst.msk [vmem:[%s4710_s22 + $0xc8] sm:$0xff] %vm1584_vm1, %v5069_v17  ;;  %v2472_v29 = vmul.f32 %v4940_v6, %v4940_v6 }
 0x1b5   : > { %v1821_v3 = vpack.c.bf16 %v1796_v61, %v1795_v45  ;;  %v2309_v59 = vpop.f32.mrf.mxu1 }
 0x1b6   : > { %2367 = vst.msk [vmem:[%s4710_s22 + $0x78] sm:$0xff] %vm1584_vm1, %v2309_v59  ;;  %v2413_v37 = vsel %vm1584_vm1, %v2309_v59, 0.0  ;;  %v2468_v8 = vmul.f32 %v2309_v59, %v2309_v59 }
 0x1b7   : > { %2899 = vmatmul.msk.bf16.gmra.mxu0 %vm1851_vm9, %v1821_v3  ;;  %v2414_v12 = vadd.f32 %v2413_v37, %v2412_v58  ;;  %v3575_v58 = vpop.permute.xlu2 %3574 }
 0x1b8   : > { %v3540_v18 = vpop.permute.xlu1 %3539  ;;  %v3535_v1 = vpop.permute.xlu0 %3534  ;;  %v2514_v52 = vsel %vm1584_vm1, %v2468_v8, 0.0  ;;  %v5524_v8 = vld [vmem:[#allocation23_spill] sm:$0xff] }
 0x1b9   : > { %v3542_v23 = vunpack.i.h.bf16 %v3540_v18  ;;  %v3541_v26 = vunpack.i.l.bf16 %v3540_v18  ;;  %v3537_v13 = vunpack.i.h.bf16 %v3535_v1  ;;  %v3536_v47 = vunpack.i.l.bf16 %v3535_v1 }
 0x1ba   : > { %v2515_v20 = vadd.f32 %v2514_v52, %v2513_v19  ;;  %v2520_v19 = vsel %vm1584_vm1, %v2471_v39, 0.0  ;;  %v2421_v18 = vsel %vm1584_vm1, %v4940_v6, 0.0  ;;  %v2522_v1 = vsel %vm1584_vm1, %v2472_v29, 0.0 }
 0x1bb   : > { %v1743_v42 = vsel %vm1716_vm6, %v1710_v55, %v3536_v47  ;;  %v1744_v0 = vsel %vm1716_vm6, %v1711_v11, %v3537_v13  ;;  %v5091_v30 = vpop.f32.mrf.mxu3  ;;  %v2475_v6 = vmul.f32 %v4998_v57, %v4998_v57 }
 0x1bc   : > { %v1776_v32 = vsel %vm1749_vm7, %v1743_v42, %v3541_v26  ;;  %v1777_v2 = vsel %vm1749_vm7, %v1744_v0, %v3542_v23  ;;  %2378 = vst.msk [vmem:[%s4710_s22 + $0xd0] sm:$0xff] %vm1584_vm1, %v5091_v30  ;;  %v2423_v23 = vsel %vm1584_vm1, %v4962_v24, 0.0  ;;  %v2474_v26 = vmul.f32 %v4979_v50, %v4979_v50 }
 0x1bd   : > { %v1809_v56 = vsel %vm1782_vm8, %v1776_v32, %v3546_v35  ;;  %v1810_v49 = vsel %vm1782_vm8, %v1777_v2, %v3547_v22  ;;  %v2312_v53 = vpop.f32.mrf.mxu1  ;;  %v2476_v42 = vmul.f32 %v5024_v34, %v5024_v34  ;;  %v2477_v2 = vmul.f32 %v5049_v28, %v5049_v28 }
 0x1be   : > { %v1828_v4 = vpack.c.bf16 %v1810_v49, %v1809_v56  ;;  %2368 = vst.msk [vmem:[%s4710_s22 + $0x80] sm:$0xff] %vm1584_vm1, %v2312_v53  ;;  %v2415_v25 = vsel %vm1584_vm1, %v2312_v53, 0.0  ;;  %v2469_v48 = vmul.f32 %v2312_v53, %v2312_v53  ;;  %v2425_v56 = vsel %vm1584_vm1, %v4979_v50, 0.0 }
 0x1bf   : > { %v2416_v15 = vadd.f32 %v2415_v25, %v2414_v12  ;;  %v2526_v49 = vsel %vm1584_vm1, %v2474_v26, 0.0  ;;  %v2431_v53 = vsel %vm1584_vm1, %v5049_v28, 0.0 }
 0x1c0   : > { %v3555_v21 = vpop.permute.xlu1 %3554  ;;  %v3550_v33 = vpop.permute.xlu0 %3549  ;;  %2906 = vmatmul.msk.bf16.gmra.mxu2 %vm1851_vm9, %v1828_v4  ;;  %v2516_v9 = vsel %vm1584_vm1, %v2469_v48, 0.0 }
 0x1c1   : > { %v3557_v27 = vunpack.i.h.bf16 %v3555_v21  ;;  %v3556_v41 = vunpack.i.l.bf16 %v3555_v21  ;;  %v3552_v7 = vunpack.i.h.bf16 %v3550_v33  ;;  %v3551_v14 = vunpack.i.l.bf16 %v3550_v33 }
 0x1c2   : > { %v2517_v3 = vadd.f32 %v2516_v9, %v2515_v20  ;;  %v2528_v21 = vsel %vm1584_vm1, %v2475_v6, 0.0  ;;  %v3577_v33 = vunpack.i.h.bf16 %v3575_v58  ;;  %v5526_v6 = vld [vmem:[#allocation28_spill] sm:$0xff] }
 0x1c3   : > { %v1731_v54 = vsel %vm1716_vm6, %v4631_v31, %v3551_v14  ;;  %v1732_v5 = vsel %vm1716_vm6, %v1699_v16, %v3552_v7  ;;  %v5115_v43 = vpop.f32.mrf.mxu3  ;;  %v2473_v31 = vmul.f32 %v4962_v24, %v4962_v24  ;;  %v2429_v14 = vsel %vm1584_vm1, %v5024_v34, 0.0 }
 0x1c4   : > { %v1764_v62 = vsel %vm1749_vm7, %v1731_v54, %v3556_v41  ;;  %v1765_v60 = vsel %vm1749_vm7, %v1732_v5, %v3557_v27  ;;  %2379 = vst.msk [vmem:[%s4710_s22 + $0xd8] sm:$0xff] %vm1584_vm1, %v5115_v43  ;;  %v3590_v27 = vpop.permute.xlu2 %3589  ;;  %v2532_v16 = vsel %vm1584_vm1, %v2477_v2, 0.0 }
 0x1c5   : > { %v1797_v45 = vsel %vm1782_vm8, %v1764_v62, %v3561_v36  ;;  %v1798_v61 = vsel %vm1782_vm8, %v1765_v60, %v3562_v46  ;;  %v2314_v47 = vpop.f32.mrf.mxu1  ;;  %v2524_v59 = vsel %vm1584_vm1, %v2473_v31, 0.0  ;;  %v3576_v46 = vunpack.i.l.bf16 %v3575_v58 }
 0x1c6   : > { %v1822_v63 = vpack.c.bf16 %v1798_v61, %v1797_v45  ;;  %2369 = vst.msk [vmem:[%s4710_s22 + $0x88] sm:$0xff] %vm1584_vm1, %v2314_v47  ;;  %v2417_v11 = vsel %vm1584_vm1, %v2314_v47, 0.0  ;;  %v2470_v55 = vmul.f32 %v2314_v47, %v2314_v47  ;;  %v3592_v45 = vunpack.i.h.bf16 %v3590_v27 }
 0x1c7   : > { %v2418_v38 = vadd.f32 %v2417_v11, %v2416_v15  ;;  %v2478_v15 = vmul.f32 %v5069_v17, %v5069_v17 }
 0x1c8   : > { %v3570_v22 = vpop.permute.xlu1 %3569  ;;  %v3565_v35 = vpop.permute.xlu0 %3564  ;;  %2900 = vmatmul.msk.bf16.gmra.mxu0 %vm1851_vm9, %v1822_v63  ;;  %v2518_v12 = vsel %vm1584_vm1, %v2470_v55, 0.0 }
 0x1c9   : > { %v3567_v13 = vunpack.i.h.bf16 %v3565_v35  ;;  %v3566_v44 = vunpack.i.l.bf16 %v3565_v35  ;;  %v3572_v24 = vunpack.i.h.bf16 %v3570_v22  ;;  %v3571_v0 = vunpack.i.l.bf16 %v3570_v22 }
 0x1ca   : > { %v2420_v40 = vadd.f32 %v2419_v10, %v2418_v38  ;;  %v2519_v4 = vadd.f32 %v2518_v12, %v2517_v3  ;;  %v3591_v3 = vunpack.i.l.bf16 %v3590_v27  ;;  %v5525_v10 = vld [vmem:[#allocation27_spill] sm:$0xff]  ;;  %v2433_v22 = vsel %vm1584_vm1, %v5069_v17, 0.0 }
 0x1cb   : > { %v1712_v37 = vsel %vm1683_vm5, %v4523_v51, %v3566_v44  ;;  %v1713_v32 = vsel %vm1683_vm5, %v5524_v8, %v3567_v13  ;;  %v2427_v51 = vsel %vm1584_vm1, %v4998_v57, 0.0  ;;  %v2530_v57 = vsel %vm1584_vm1, %v2476_v42, 0.0 }
 0x1cc   : > { %v5158_v20 = vpop.f32.mrf.mxu3  ;;  %v1745_v36 = vsel %vm1716_vm6, %v1712_v37, %v3571_v0  ;;  %v1746_v50 = vsel %vm1716_vm6, %v1713_v32, %v3572_v24  ;;  %v2422_v41 = vadd.f32 %v2421_v18, %v2420_v40  ;;  %v2521_v7 = vadd.f32 %v2520_v19, %v2519_v4 }
 0x1cd   : > { %v1913_v52 = vpop.f32.mrf.mxu0  ;;  %2380 = vst.msk [vmem:[%s4710_s22 + $0xe0] sm:$0xff] %vm1584_vm1, %v5158_v20  ;;  %v1778_v29 = vsel %vm1749_vm7, %v1745_v36, %v3576_v46  ;;  %v1779_v62 = vsel %vm1749_vm7, %v1746_v50, %v3577_v33  ;;  %v2479_v17 = vmul.f32 %v5091_v30, %v5091_v30  ;;  %v2435_v46 = vsel %vm1584_vm1, %v5091_v30, 0.0 }
 0x1ce   : > { %1993 = vst.msk [vmem:[%s5146_s25] sm:$0xff] %vm1584_vm1, %v1913_v52  ;;  %v2424_v34 = vadd.f32 %v2423_v23, %v2422_v41  ;;  %v2523_v60 = vadd.f32 %v2522_v1, %v2521_v7  ;;  %v2094_v58 = vmul.f32 %v1913_v52, %v1913_v52  ;;  %v2534_v1 = vsel %vm1584_vm1, %v2478_v15, 0.0 }
 0x1cf   : > { %v2025_v26 = vsel %vm1584_vm1, %v1913_v52, 0.0  ;;  %v2480_v50 = vmul.f32 %v5115_v43, %v5115_v43 }
 0x1d0   : > { %v3585_v25 = vpop.permute.xlu1 %3584  ;;  %v3580_v48 = vpop.permute.xlu0 %3579  ;;  %v2426_v63 = vadd.f32 %v2425_v56, %v2424_v34  ;;  %v2525_v35 = vadd.f32 %v2524_v59, %v2523_v60  ;;  %v2126_v59 = vsel %vm1584_vm1, %v2094_v58, 0.0 }
 0x1d1   : > { %v3586_v39 = vunpack.i.l.bf16 %v3585_v25  ;;  %v3582_v54 = vunpack.i.h.bf16 %v3580_v48  ;;  %v3581_v5 = vunpack.i.l.bf16 %v3580_v48  ;;  %v3587_v9 = vunpack.i.h.bf16 %v3585_v25 }
 0x1d2   : > { %v2428_v47 = vadd.f32 %v2427_v51, %v2426_v63  ;;  %v2527_v42 = vadd.f32 %v2526_v49, %v2525_v35 }
 0x1d3   : > { %v1811_v28 = vsel %vm1782_vm8, %v1778_v29, %v3581_v5  ;;  %v1812_v61 = vsel %vm1782_vm8, %v1779_v62, %v3582_v54  ;;  %v1714_v19 = vsel %vm1683_vm5, %v5525_v10, %v3586_v39  ;;  %v1715_v11 = vsel %vm1683_vm5, %v5526_v6, %v3587_v9 }
 0x1d4   : > { %v1829_v31 = vpack.c.bf16 %v1812_v61, %v1811_v28  ;;  %v2344_v23 = vpop.f32.mrf.mxu3  ;;  %v1747_v24 = vsel %vm1716_vm6, %v1714_v19, %v3591_v3  ;;  %v2430_v37 = vadd.f32 %v2429_v14, %v2428_v47  ;;  %v2529_v56 = vadd.f32 %v2528_v21, %v2527_v42 }
 0x1d5   : > { %v1915_v18 = vpop.f32.mrf.mxu0  ;;  %2381 = vst.msk [vmem:[%s4710_s22 + $0xe8] sm:$0xff] %vm1584_vm1, %v2344_v23  ;;  %v1748_v52 = vsel %vm1716_vm6, %v1715_v11, %v3592_v45  ;;  %v2536_v14 = vsel %vm1584_vm1, %v2479_v17, 0.0  ;;  %v2481_v5 = vmul.f32 %v5158_v20, %v5158_v20  ;;  %v2439_v29 = vsel %vm1584_vm1, %v5158_v20, 0.0 }
 0x1d6   : > { %1994 = vst.msk [vmem:[%s5146_s25 + $0x8] sm:$0xff] %vm1584_vm1, %v1915_v18  ;;  %v2026_v13 = vsel %vm1584_vm1, %v1915_v18, 0.0  ;;  %v2095_v44 = vmul.f32 %v1915_v18, %v1915_v18  ;;  %2907 = vmatmul.msk.bf16.gmra.mxu2 %vm1851_vm9, %v1829_v31  ;;  %v2432_v49 = vadd.f32 %v2431_v53, %v2430_v37  ;;  %v2531_v36 = vadd.f32 %v2530_v57, %v2529_v56 }
 0x1d7   : > { %v2027_v55 = vadd.f32 %v2026_v13, %v2025_v26  ;;  %v2437_v53 = vsel %vm1584_vm1, %v5115_v43, 0.0  ;;  %v2482_v60 = vmul.f32 %v2344_v23, %v2344_v23  ;;  %v2441_v28 = vsel %vm1584_vm1, %v2344_v23, 0.0 }
 0x1d8   : > { %v2127_v0 = vsel %vm1584_vm1, %v2095_v44, 0.0  ;;  %v3595_v38 = vpop.permute.xlu0 %3594  ;;  %v2434_v41 = vadd.f32 %v2433_v22, %v2432_v49  ;;  %v2533_v48 = vadd.f32 %v2532_v16, %v2531_v36  ;;  %v2538_v16 = vsel %vm1584_vm1, %v2480_v50, 0.0 }
 0x1d9   : > { %v2128_v8 = vadd.f32 %v2127_v0, %v2126_v59  ;;  %v3597_v32 = vunpack.i.h.bf16 %v3595_v38  ;;  %v3596_v2 = vunpack.i.l.bf16 %v3595_v38  ;;  %v3600_v12 = vpop.permute.xlu1 %3599  ;;  %v2540_v3 = vsel %vm1584_vm1, %v2481_v5, 0.0 }
 0x1da   : > { %v3602_v40 = vunpack.i.h.bf16 %v3600_v12  ;;  %v3601_v4 = vunpack.i.l.bf16 %v3600_v12  ;;  %v2436_v54 = vadd.f32 %v2435_v46, %v2434_v41  ;;  %v2535_v62 = vadd.f32 %v2534_v1, %v2533_v48 }
 0x1db   : > { %v1780_v51 = vsel %vm1749_vm7, %v1747_v24, %v3596_v2  ;;  %v1781_v33 = vsel %vm1749_vm7, %v1748_v52, %v3597_v32  ;;  %v2542_v10 = vsel %vm1584_vm1, %v2482_v60, 0.0 }
 0x1dc   : > { %v1813_v27 = vsel %vm1782_vm8, %v1780_v51, %v3601_v4  ;;  %v1814_v21 = vsel %vm1782_vm8, %v1781_v33, %v3602_v40  ;;  %v2347_v39 = vpop.f32.mrf.mxu3  ;;  %v2438_v34 = vadd.f32 %v2437_v53, %v2436_v54  ;;  %v2537_v45 = vadd.f32 %v2536_v14, %v2535_v62 }
 0x1dd   : > { %v1918_v7 = vpop.f32.mrf.mxu0  ;;  %v1830_v25 = vpack.c.bf16 %v1814_v21, %v1813_v27  ;;  %2382 = vst.msk [vmem:[%s4710_s22 + $0xf0] sm:$0xff] %vm1584_vm1, %v2347_v39  ;;  %v2483_v61 = vmul.f32 %v2347_v39, %v2347_v39  ;;  %v2443_v20 = vsel %vm1584_vm1, %v2347_v39, 0.0 }
 0x1de   : > { %1995 = vst.msk [vmem:[%s5146_s25 + $0x10] sm:$0xff] %vm1584_vm1, %v1918_v7  ;;  %v2028_v30 = vsel %vm1584_vm1, %v1918_v7, 0.0  ;;  %v2096_v57 = vmul.f32 %v1918_v7, %v1918_v7  ;;  %v2440_v58 = vadd.f32 %v2439_v29, %v2438_v34  ;;  %v2539_v31 = vadd.f32 %v2538_v16, %v2537_v45 }
 0x1df   : > { %v2029_v15 = vadd.f32 %v2028_v30, %v2027_v55  ;;  %v2544_v22 = vsel %vm1584_vm1, %v2483_v61, 0.0 }
 0x1e0   : > { %v2129_v43 = vsel %vm1584_vm1, %v2096_v57, 0.0  ;;  %v2442_v63 = vadd.f32 %v2441_v28, %v2440_v58  ;;  %v2541_v18 = vadd.f32 %v2540_v3, %v2539_v31 }
 0x1e1   : > { %v2130_v9 = vadd.f32 %v2129_v43, %v2128_v8 }
 0x1e2   : > { %v2444_v26 = vadd.f32 %v2443_v20, %v2442_v63  ;;  %v2543_v47 = vadd.f32 %v2542_v10, %v2541_v18 }
 0x1e4   : > { %v2349_v1 = vpop.f32.mrf.mxu3  ;;  %v2545_v59 = vadd.f32 %v2544_v22, %v2543_v47 }
 0x1e5   : > { %v1920_v19 = vpop.f32.mrf.mxu0  ;;  %v2445_v13 = vsel %vm1584_vm1, %v2349_v1, 0.0  ;;  %2383 = vst.msk [vmem:[%s4710_s22 + $0xf8] sm:$0xff] %vm1584_vm1, %v2349_v1  ;;  %v2484_v6 = vmul.f32 %v2349_v1, %v2349_v1 }
 0x1e6   : > { %1996 = vst.msk [vmem:[%s5146_s25 + $0x18] sm:$0xff] %vm1584_vm1, %v1920_v19  ;;  %v2030_v35 = vsel %vm1584_vm1, %v1920_v19, 0.0  ;;  %v2097_v23 = vmul.f32 %v1920_v19, %v1920_v19  ;;  %2908 = vmatmul.msk.bf16.gmra.mxu2 %vm1851_vm9, %v1830_v25  ;;  %v5237_v55 = vadd.f32 %v2445_v13, %v2444_v26 }
 0x1e7   : > { %v2031_v44 = vadd.f32 %v2030_v35, %v2029_v15  ;;  %v2546_v24 = vsel %vm1584_vm1, %v2484_v6, 0.0 }
 0x1e8   : > { %v2131_v11 = vsel %vm1584_vm1, %v2097_v23, 0.0  ;;  %v5245_v0 = vadd.f32 %v2546_v24, %v2545_v59 }
 0x1e9   : > { %v2132_v17 = vadd.f32 %v2131_v11, %v2130_v9  ;;  %v5239_v42 = vpop.f32.mrf.mxu2 }
 0x1ea   : > { %2009 = vst.msk [vmem:[%s5146_s25 + $0x80] sm:$0xff] %vm1584_vm1, %v5239_v42 }
 0x1ed   : > { %v1923_v38 = vpop.f32.mrf.mxu0 }
 0x1ee   : > { %1997 = vst.msk [vmem:[%s5146_s25 + $0x20] sm:$0xff] %vm1584_vm1, %v1923_v38  ;;  %v2032_v37 = vsel %vm1584_vm1, %v1923_v38, 0.0  ;;  %v2098_v8 = vmul.f32 %v1923_v38, %v1923_v38 }
 0x1ef   : > { %v2033_v32 = vadd.f32 %v2032_v37, %v2031_v44 }
 0x1f0   : > { %v2133_v2 = vsel %vm1584_vm1, %v2098_v8, 0.0 }
 0x1f1   : > { %v2134_v12 = vadd.f32 %v2133_v2, %v2132_v17  ;;  %v5251_v56 = vpop.f32.mrf.mxu2 }
 0x1f2   : > { %2010 = vst.msk [vmem:[%s5146_s25 + $0x88] sm:$0xff] %vm1584_vm1, %v5251_v56 }
 0x1f5   : > { %v1925_v52 = vpop.f32.mrf.mxu0 }
 0x1f6   : > { %1998 = vst.msk [vmem:[%s5146_s25 + $0x28] sm:$0xff] %vm1584_vm1, %v1925_v52  ;;  %v2034_v40 = vsel %vm1584_vm1, %v1925_v52, 0.0  ;;  %v2099_v4 = vmul.f32 %v1925_v52, %v1925_v52 }
 0x1f7   : > { %v2035_v49 = vadd.f32 %v2034_v40, %v2033_v32 }
 0x1f8   : > { %v2135_v51 = vsel %vm1584_vm1, %v2099_v4, 0.0 }
 0x1f9   : > { %v2136_v33 = vadd.f32 %v2135_v51, %v2134_v12 }
 0x1fa   : > { %v5260_v46 = vpop.f32.mrf.mxu2 }
 0x1fb   : > { %2011 = vst.msk [vmem:[%s5146_s25 + $0x90] sm:$0xff] %vm1584_vm1, %v5260_v46 }
 0x1fd   : > { %v1928_v36 = vpop.f32.mrf.mxu0 }
 0x1fe   : > { %1999 = vst.msk [vmem:[%s5146_s25 + $0x30] sm:$0xff] %vm1584_vm1, %v1928_v36  ;;  %v2036_v50 = vsel %vm1584_vm1, %v1928_v36, 0.0  ;;  %v2100_v27 = vmul.f32 %v1928_v36, %v1928_v36 }
 0x1ff   : > { %v2037_v21 = vadd.f32 %v2036_v50, %v2035_v49 }
 0x200   : > { %v2137_v41 = vsel %vm1584_vm1, %v2100_v27, 0.0 }
 0x201   : > { %v2138_v7 = vadd.f32 %v2137_v41, %v2136_v33  ;;  %v2110_v41 = vmul.f32 %v5239_v42, %v5239_v42 }
 0x202   : > { %v5269_v14 = vpop.f32.mrf.mxu2 }
 0x203   : > { %2012 = vst.msk [vmem:[%s5146_s25 + $0x98] sm:$0xff] %vm1584_vm1, %v5269_v14 }
 0x205   : > { %v1930_v53 = vpop.f32.mrf.mxu0 }
 0x206   : > { %2000 = vst.msk [vmem:[%s5146_s25 + $0x38] sm:$0xff] %vm1584_vm1, %v1930_v53  ;;  %v2101_v43 = vmul.f32 %v1930_v53, %v1930_v53  ;;  %v2038_v34 = vsel %vm1584_vm1, %v1930_v53, 0.0 }
 0x207   : > { %v2039_v58 = vadd.f32 %v2038_v34, %v2037_v21 }
 0x208   : > { %v2139_v45 = vsel %vm1584_vm1, %v2101_v43, 0.0 }
 0x209   : > { %v2140_v63 = vadd.f32 %v2139_v45, %v2138_v7  ;;  %v2112_v45 = vmul.f32 %v5260_v46, %v5260_v46 }
 0x20b   : > { %v5276_v25 = vpop.f32.mrf.mxu2 }
 0x20c   : > { %2013 = vst.msk [vmem:[%s5146_s25 + $0xa0] sm:$0xff] %vm1584_vm1, %v5276_v25 }
 0x20d   : > { %v1933_v48 = vpop.f32.mrf.mxu0 }
 0x20e   : > { %2001 = vst.msk [vmem:[%s5146_s25 + $0x40] sm:$0xff] %vm1584_vm1, %v1933_v48  ;;  %v2102_v60 = vmul.f32 %v1933_v48, %v1933_v48  ;;  %v2040_v28 = vsel %vm1584_vm1, %v1933_v48, 0.0 }
 0x20f   : > { %v2041_v10 = vadd.f32 %v2040_v28, %v2039_v58 }
 0x210   : > { %v2141_v3 = vsel %vm1584_vm1, %v2102_v60, 0.0  ;;  %v2157_v60 = vsel %vm1584_vm1, %v2110_v41, 0.0 }
 0x211   : > { %v2142_v1 = vadd.f32 %v2141_v3, %v2140_v63  ;;  %v2113_v3 = vmul.f32 %v5269_v14, %v5269_v14  ;;  %v2161_v63 = vsel %vm1584_vm1, %v2112_v45, 0.0 }
 0x213   : > { %v5283_v39 = vpop.f32.mrf.mxu2 }
 0x214   : > { %2014 = vst.msk [vmem:[%s5146_s25 + $0xa8] sm:$0xff] %vm1584_vm1, %v5283_v39 }
 0x215   : > { %v1935_v30 = vpop.f32.mrf.mxu0 }
 0x216   : > { %2002 = vst.msk [vmem:[%s5146_s25 + $0x48] sm:$0xff] %vm1584_vm1, %v1935_v30  ;;  %v2103_v61 = vmul.f32 %v1935_v30, %v1935_v30  ;;  %v2042_v31 = vsel %vm1584_vm1, %v1935_v30, 0.0 }
 0x217   : > { %v2043_v35 = vadd.f32 %v2042_v31, %v2041_v10  ;;  %v2114_v10 = vmul.f32 %v5276_v25, %v5276_v25 }
 0x218   : > { %v2143_v19 = vsel %vm1584_vm1, %v2103_v61, 0.0 }
 0x219   : > { %v2144_v47 = vadd.f32 %v2143_v19, %v2142_v1  ;;  %v2115_v1 = vmul.f32 %v5283_v39, %v5283_v39 }
 0x221   : > { %v5290_v57 = vpop.f32.mrf.mxu2 }
 0x222   : > { %2015 = vst.msk [vmem:[%s5146_s25 + $0xb0] sm:$0xff] %vm1584_vm1, %v5290_v57 }
 0x223   : > { %v1938_v54 = vpop.f32.mrf.mxu0 }
 0x224   : > { %2003 = vst.msk [vmem:[%s5146_s25 + $0x50] sm:$0xff] %vm1584_vm1, %v1938_v54  ;;  %v2104_v20 = vmul.f32 %v1938_v54, %v1938_v54  ;;  %v2044_v18 = vsel %vm1584_vm1, %v1938_v54, 0.0  ;;  %v2056_v54 = vsel %vm1584_vm1, %v5239_v42, 0.0  ;;  %v2060_v42 = vsel %vm1584_vm1, %v5260_v46, 0.0 }
 0x225   : > { %v2045_v6 = vadd.f32 %v2044_v18, %v2043_v35  ;;  %v2064_v46 = vsel %vm1584_vm1, %v5276_v25, 0.0  ;;  %v2167_v25 = vsel %vm1584_vm1, %v2115_v1, 0.0 }
 0x226   : > { %v2145_v26 = vsel %vm1584_vm1, %v2104_v20, 0.0 }
 0x227   : > { %v2146_v38 = vadd.f32 %v2145_v26, %v2144_v47  ;;  %v2116_v47 = vmul.f32 %v5290_v57, %v5290_v57 }
 0x229   : > { %v5297_v5 = vpop.f32.mrf.mxu2 }
 0x22a   : > { %2016 = vst.msk [vmem:[%s5146_s25 + $0xb8] sm:$0xff] %vm1584_vm1, %v5297_v5 }
 0x22b   : > { %v1940_v15 = vpop.f32.mrf.mxu0 }
 0x22c   : > { %2004 = vst.msk [vmem:[%s5146_s25 + $0x58] sm:$0xff] %vm1584_vm1, %v1940_v15  ;;  %v2105_v22 = vmul.f32 %v1940_v15, %v1940_v15  ;;  %v2046_v13 = vsel %vm1584_vm1, %v1940_v15, 0.0  ;;  %v2111_v15 = vmul.f32 %v5251_v56, %v5251_v56 }
 0x22d   : > { %v2047_v37 = vadd.f32 %v2046_v13, %v2045_v6 }
 0x22e   : > { %v2147_v17 = vsel %vm1584_vm1, %v2105_v22, 0.0  ;;  %v2159_v58 = vsel %vm1584_vm1, %v2111_v15, 0.0  ;;  %v2163_v22 = vsel %vm1584_vm1, %v2113_v3, 0.0 }
 0x22f   : > { %v2148_v12 = vadd.f32 %v2147_v17, %v2146_v38  ;;  %v2068_v17 = vsel %vm1584_vm1, %v5290_v57, 0.0 }
 0x232   : > { %v5304_v29 = vpop.f32.mrf.mxu2 }
 0x233   : > { %2017 = vst.msk [vmem:[%s5146_s25 + $0xc0] sm:$0xff] %vm1584_vm1, %v5304_v29  ;;  %v2072_v57 = vsel %vm1584_vm1, %v5304_v29, 0.0 }
 0x234   : > { %v1943_v62 = vpop.f32.mrf.mxu0 }
 0x235   : > { %2005 = vst.msk [vmem:[%s5146_s25 + $0x60] sm:$0xff] %vm1584_vm1, %v1943_v62  ;;  %v2106_v44 = vmul.f32 %v1943_v62, %v1943_v62  ;;  %v2048_v59 = vsel %vm1584_vm1, %v1943_v62, 0.0 }
 0x236   : > { %v2049_v52 = vadd.f32 %v2048_v59, %v2047_v37  ;;  %v2117_v59 = vmul.f32 %v5297_v5, %v5297_v5  ;;  %v2070_v37 = vsel %vm1584_vm1, %v5297_v5, 0.0 }
 0x237   : > { %v2149_v8 = vsel %vm1584_vm1, %v2106_v44, 0.0  ;;  %v2165_v44 = vsel %vm1584_vm1, %v2114_v10, 0.0 }
 0x238   : > { %v2150_v49 = vadd.f32 %v2149_v8, %v2148_v12  ;;  %v2118_v8 = vmul.f32 %v5304_v29, %v5304_v29  ;;  %v2171_v12 = vsel %vm1584_vm1, %v2117_v59, 0.0 }
 0x23a   : > { %v5311_v16 = vpop.f32.mrf.mxu2 }
 0x23b   : > { %2018 = vst.msk [vmem:[%s5146_s25 + $0xc8] sm:$0xff] %vm1584_vm1, %v5311_v16  ;;  %v2074_v5 = vsel %vm1584_vm1, %v5311_v16, 0.0 }
 0x23c   : > { %v1945_v9 = vpop.f32.mrf.mxu0 }
 0x23d   : > { %2006 = vst.msk [vmem:[%s5146_s25 + $0x68] sm:$0xff] %vm1584_vm1, %v1945_v9  ;;  %v2107_v24 = vmul.f32 %v1945_v9, %v1945_v9  ;;  %v2050_v32 = vsel %vm1584_vm1, %v1945_v9, 0.0  ;;  %v2058_v9 = vsel %vm1584_vm1, %v5251_v56, 0.0  ;;  %v2062_v56 = vsel %vm1584_vm1, %v5269_v14, 0.0 }
 0x23e   : > { %v2051_v51 = vadd.f32 %v2050_v32, %v2049_v52  ;;  %v2066_v14 = vsel %vm1584_vm1, %v5283_v39, 0.0  ;;  %v2169_v39 = vsel %vm1584_vm1, %v2116_v47, 0.0  ;;  %v2119_v52 = vmul.f32 %v5311_v16, %v5311_v16 }
 0x23f   : > { %v2151_v40 = vsel %vm1584_vm1, %v2107_v24, 0.0 }
 0x240   : > { %v2152_v50 = vadd.f32 %v2151_v40, %v2150_v49  ;;  %v2175_v29 = vsel %vm1584_vm1, %v2119_v52, 0.0 }
 0x243   : > { %v5325_v23 = vpop.f32.mrf.mxu2 }
 0x244   : > { %2019 = vst.msk [vmem:[%s5146_s25 + $0xd0] sm:$0xff] %vm1584_vm1, %v5325_v23 }
 0x245   : > { %v1948_v11 = vpop.f32.mrf.mxu0 }
 0x246   : > { %2007 = vst.msk [vmem:[%s5146_s25 + $0x70] sm:$0xff] %vm1584_vm1, %v1948_v11  ;;  %v2108_v2 = vmul.f32 %v1948_v11, %v1948_v11  ;;  %v2052_v4 = vsel %vm1584_vm1, %v1948_v11, 0.0 }
 0x247   : > { %v2053_v27 = vadd.f32 %v2052_v4, %v2051_v51  ;;  %v2173_v51 = vsel %vm1584_vm1, %v2118_v8, 0.0 }
 0x248   : > { %v2153_v36 = vsel %vm1584_vm1, %v2108_v2, 0.0 }
 0x249   : > { %v2154_v48 = vadd.f32 %v2153_v36, %v2152_v50  ;;  %v2120_v36 = vmul.f32 %v5325_v23, %v5325_v23 }
 0x24b   : > { %v5340_v33 = vpop.f32.mrf.mxu2  ;;  %v2177_v16 = vsel %vm1584_vm1, %v2120_v36, 0.0 }
 0x24c   : > { %2020 = vst.msk [vmem:[%s5146_s25 + $0xd8] sm:$0xff] %vm1584_vm1, %v5340_v33  ;;  %v2121_v41 = vmul.f32 %v5340_v33, %v5340_v33 }
 0x24d   : > { %v1950_v21 = vpop.f32.mrf.mxu0 }
 0x24e   : > { %2008 = vst.msk [vmem:[%s5146_s25 + $0x78] sm:$0xff] %vm1584_vm1, %v1950_v21  ;;  %v2054_v7 = vsel %vm1584_vm1, %v1950_v21, 0.0  ;;  %v2109_v53 = vmul.f32 %v1950_v21, %v1950_v21  ;;  %v2076_v21 = vsel %vm1584_vm1, %v5325_v23, 0.0 }
 0x24f   : > { %v2055_v30 = vadd.f32 %v2054_v7, %v2053_v27 }
 0x250   : > { %v2155_v62 = vsel %vm1584_vm1, %v2109_v53, 0.0 }
 0x251   : > { %v2057_v43 = vadd.f32 %v2056_v54, %v2055_v30  ;;  %v2156_v34 = vadd.f32 %v2155_v62, %v2154_v48  ;;  %v2078_v48 = vsel %vm1584_vm1, %v5340_v33, 0.0  ;;  %v2179_v62 = vsel %vm1584_vm1, %v2121_v41, 0.0 }
 0x253   : > { %v2059_v28 = vadd.f32 %v2058_v9, %v2057_v43  ;;  %v2158_v61 = vadd.f32 %v2157_v60, %v2156_v34 }
 0x255   : > { %v2061_v31 = vadd.f32 %v2060_v42, %v2059_v28  ;;  %v2160_v20 = vadd.f32 %v2159_v58, %v2158_v61  ;;  %v2447_v58 = vrot.slane %v5237_v55, 4 }
 0x257   : > { %v2063_v19 = vadd.f32 %v2062_v56, %v2061_v31  ;;  %v2162_v18 = vadd.f32 %v2161_v63, %v2160_v20  ;;  %v2548_v31 = vrot.slane %v5245_v0, 4 }
 0x259   : > { %v2065_v35 = vadd.f32 %v2064_v46, %v2063_v19  ;;  %v2164_v26 = vadd.f32 %v2163_v22, %v2162_v18  ;;  %v1983_v13 = vpop.f32.mrf.mxu2  ;;  %v2448_v19 = vadd.f32 %v2447_v58, %v5237_v55  ;;  %v2549_v1 = vadd.f32 %v2548_v31, %v5245_v0 }
 0x25a   : > { %2021 = vst.msk [vmem:[%s5146_s25 + $0xe0] sm:$0xff] %vm1584_vm1, %v1983_v13  ;;  %v2122_v30 = vmul.f32 %v1983_v13, %v1983_v13  ;;  %v2080_v43 = vsel %vm1584_vm1, %v1983_v13, 0.0 }
 0x25b   : > { %v2067_v6 = vadd.f32 %v2066_v14, %v2065_v35  ;;  %v2166_v11 = vadd.f32 %v2165_v44, %v2164_v26  ;;  %v2449_v47 = vrot.slane %v2448_v19, 2 }
 0x25c   : > { %v2181_v9 = vsel %vm1584_vm1, %v2122_v30, 0.0 }
 0x25d   : > { %v2168_v24 = vadd.f32 %v2167_v25, %v2166_v11  ;;  %v2069_v38 = vadd.f32 %v2068_v17, %v2067_v6  ;;  %v2550_v6 = vrot.slane %v2549_v1, 2  ;;  %v2450_v59 = vadd.f32 %v2449_v47, %v2448_v19 }
 0x25f   : > { %v2071_v32 = vadd.f32 %v2070_v37, %v2069_v38  ;;  %v2170_v2 = vadd.f32 %v2169_v39, %v2168_v24  ;;  %v2551_v24 = vadd.f32 %v2550_v6, %v2549_v1 }
 0x261   : > { %v2073_v40 = vadd.f32 %v2072_v57, %v2071_v32  ;;  %v2172_v4 = vadd.f32 %v2171_v12, %v2170_v2  ;;  %v1985_v49 = vpop.f32.mrf.mxu2  ;;  %v2451_v32 = vrot.slane %v2450_v59, 1  ;;  %v2552_v0 = vrot.slane %v2551_v24, 1 }
 0x262   : > { %2022 = vst.msk [vmem:[%s5146_s25 + $0xe8] sm:$0xff] %vm1584_vm1, %v1985_v49  ;;  %v2123_v45 = vmul.f32 %v1985_v49, %v1985_v49  ;;  %v2082_v61 = vsel %vm1584_vm1, %v1985_v49, 0.0 }
 0x263   : > { %v2075_v50 = vadd.f32 %v2074_v5, %v2073_v40  ;;  %v2174_v27 = vadd.f32 %v2173_v51, %v2172_v4  ;;  %v2452_v52 = vadd.f32 %v2451_v32, %v2450_v59  ;;  %v2553_v40 = vadd.f32 %v2552_v0, %v2551_v24 }
 0x264   : > { %v2183_v42 = vsel %vm1584_vm1, %v2123_v45, 0.0 }
 0x265   : > { %v2077_v7 = vadd.f32 %v2076_v21, %v2075_v50  ;;  %v2176_v53 = vadd.f32 %v2175_v29, %v2174_v27 }
 0x267   : > { %v2079_v54 = vadd.f32 %v2078_v48, %v2077_v7  ;;  %v2178_v15 = vadd.f32 %v2177_v16, %v2176_v53 }
 0x269   : > { %v2081_v34 = vadd.f32 %v2080_v43, %v2079_v54  ;;  %v2180_v23 = vadd.f32 %v2179_v62, %v2178_v15  ;;  %v1988_v60 = vpop.f32.mrf.mxu2 }
 0x26a   : > { %2023 = vst.msk [vmem:[%s5146_s25 + $0xf0] sm:$0xff] %vm1584_vm1, %v1988_v60  ;;  %v2124_v3 = vmul.f32 %v1988_v60, %v1988_v60  ;;  %v2084_v63 = vsel %vm1584_vm1, %v1988_v60, 0.0 }
 0x26b   : > { %v2182_v28 = vadd.f32 %v2181_v9, %v2180_v23  ;;  %v2083_v33 = vadd.f32 %v2082_v61, %v2081_v34 }
 0x26c   : > { %v2185_v18 = vsel %vm1584_vm1, %v2124_v3, 0.0 }
 0x26d   : > { %v2184_v20 = vadd.f32 %v2183_v42, %v2182_v28  ;;  %v2085_v56 = vadd.f32 %v2084_v63, %v2083_v33 }
 0x26f   : > { %v2186_v35 = vadd.f32 %v2185_v18, %v2184_v20 }
 0x271   : > { %v1990_v10 = vpop.f32.mrf.mxu2 }
 0x272   : > { %2024 = vst.msk [vmem:[%s5146_s25 + $0xf8] sm:$0xff] %vm1584_vm1, %v1990_v10  ;;  %v2086_v22 = vsel %vm1584_vm1, %v1990_v10, 0.0  ;;  %v2125_v46 = vmul.f32 %v1990_v10, %v1990_v10 }
 0x273   : > { %v2087_v26 = vadd.f32 %v2086_v22, %v2085_v56 }
 0x274   : > { %v2187_v13 = vsel %vm1584_vm1, %v2125_v46, 0.0 }
 0x275   : > { %v2088_v44 = vrot.slane %v2087_v26, 4  ;;  %v2188_v14 = vadd.f32 %v2187_v13, %v2186_v35 }
 0x277   : > { %v2089_v11 = vadd.f32 %v2088_v44, %v2087_v26  ;;  %v2189_v25 = vrot.slane %v2188_v14, 4 }
 0x279   : > { %v2090_v55 = vrot.slane %v2089_v11, 2  ;;  %v2190_v17 = vadd.f32 %v2189_v25, %v2188_v14 }
 0x27b   : > { %v2091_v38 = vadd.f32 %v2090_v55, %v2089_v11  ;;  %v2191_v39 = vrot.slane %v2190_v17, 2 }
 0x27d   : > { %v2092_v37 = vrot.slane %v2091_v38, 1  ;;  %v2192_v8 = vadd.f32 %v2191_v39, %v2190_v17 }
 0x27f   : > { %v2193_v2 = vrot.slane %v2192_v8, 1  ;;  %v2093_v12 = vadd.f32 %v2092_v37, %v2091_v38 }
 0x281   : > { %v2194_v57 = vadd.f32 %v2193_v2, %v2192_v8  ;;  %2562 = sbr.rel (%p2925_p4) target bundleno = 648 (0x288), region = 36 }
 0x283   : > { %v2555_v4 = vsel %vm2554_vm10, %v2093_v12, %v2194_v57 }
 0x284   : > { %v2556_v49 = vsel %vm1900_vm3, %v2555_v4, %v2452_v52 }
 0x285   : > { %v2558_v51 = vsel %vm2557_vm11, %v2556_v49, %v2553_v40 }
 0x286   : > { %vm2563_vm12 = vcmask 60416   ;;  %v3673_v5 = vmov 0.0  }
 0x287   : > { %2564 = vst.msk [vmem:[#allocation2] sm:$0xf] %vm2563_vm12, %v3673_v5 }
 0x288 PF: > { %vm2567_vm13 = vcmask 60416   ;;  %p2943_p5 = scmp.eq.s32.totalorder %s3711_s19, 1  ;;  %s2593_s27 = sshll.u32 %s5444_s5, 4  ;;  %s2594_s27 = int_to_ptr.hbm [resolvable:$true] %s2593_s27 }
 0x289   : > { %s3674_s28 = smov [#allocation2]  }
 0x28a   : > { %s2591_s29 = sshll.u32 %s3674_s28, 4  ;;  %s2592_s29 = int_to_ptr.vmem [resolvable:$true] %s2591_s29 }
 0x28e   : > { %v2565_v36 = vld [vmem:[#allocation2] sm:$0xf] }
 0x28f   : > { %v2566_v50 = vadd.f32 %v2565_v36, %v2558_v51 }
 0x291   : > { %2568 = vst.msk [vmem:[#allocation2] sm:$0xf] %vm2567_vm13, %v2566_v50 }
 0x292   : > { %2940 = dma.vmem_to_hbm [thread:$0]  (%p2943_p5), %s2592_s29, 64, %s2594_s27, [#allocation3]  }
 0x293   : > { %3658 = dma.done.wait (%p2943_p5), [#allocation3], 64  }
 0x294   : > { %3660 = vsyncadd (%p2943_p5), [#allocation3], 4294967232 }
 0x295 PF: > { %s17_s18 = sadd.s32 1, %s3663_s18  }
 0x296   : > { %p14_p6 = scmp.ge.s32.totalorder %s17_s18, 4  }
 0x298   :  { %16 = sbr.rel (!%p14_p6) target bundleno = 1 (0x1), region = 89 }
 0x29d   :  { %2623 = vsyncpa [#allocation3], 1 }
 0x29e   :  { %2625 = vsyncpa [#allocation3 + $0x1], 1 }

</bundles_post_ra>
